<compile_context>
chip_gen: v7x
topology: tpu7x:2x2x1
jax: 0.10.0
libtpu: 0.0.40
codegen_flags: <defaults>
</compile_context>

<pallas_src>
import functools

import jax
import jax.numpy as jnp
from jax.experimental import pallas as pl
from jax.experimental.pallas import tpu as pltpu

LANE = 128
SUB = 8


def _round_up(x, m):
    return ((x + m - 1) // m) * m


def _const_spec(shape):
    """Full-array block whose index is constant across the grid (VMEM-resident)."""
    n = len(shape)
    return pl.BlockSpec(tuple(shape), lambda b, _n=n: (0,) * _n)


# ----------------------------------------------------------------------------
# Fused TCN + fc-head kernel (one grid step = Bt samples)
# ----------------------------------------------------------------------------
def _make_fused_kernel(block_cfgs, K, Bt, T_real, T_pad, halo, cp, has_ds):
    """block_cfgs: tuple of (dilation, ds_slot_or_None) — static Python data."""
    n_blocks = len(block_cfgs)
    M = Bt * T_pad

    def kernel(*refs):
        it = iter(refs)
        x_ref = next(it)                      # (Bt, T_pad, cp)        f32
        w1_ref = next(it)                     # (n_blocks*K, cp, cp)   bf16
        b1_ref = next(it)                     # (n_blocks, 1, cp)      f32
        w2_ref = next(it)                     # (n_blocks*K, cp, cp)   bf16
        b2_ref = next(it)                     # (n_blocks, 1, cp)      f32
        wd_ref = bd_ref = None
        if has_ds:                            # static python bool
            wd_ref = next(it)                 # (n_ds, cp, cp)         bf16
            bd_ref = next(it)                 # (n_ds, 1, cp)          f32
        fcw_ref = next(it)                    # (cp, LANE)             bf16
        fcb_ref = next(it)                    # (1, LANE)              f32
        o_ref = next(it)                      # (Bt, LANE)             f32
        abuf_ref = next(it)                   # (Bt, halo+T_pad, cp)   f32 scratch
        bbuf_ref = next(it)                   # (Bt, halo+T_pad, cp)   f32 scratch
        flat_ref = next(it)                   # (M, cp)                f32 scratch

        # Zero the causal halos.  Done every step (it is tiny) so the result is
        # correct even when the parallel batch grid is split across cores.
        zhalo = jnp.zeros((Bt, halo, cp), jnp.float32)
        abuf_ref[:, :halo, :] = zhalo
        bbuf_ref[:, :halo, :] = zhalo

        # Stage this batch-block of the input behind the zero halo.
        abuf_ref[:, halo:, :] = x_ref[...]

        def causal_conv(src_ref, w_ref, bias_ref, li, dil):
            # K per-tap (M, cp) @ (cp, cp) MXU matmuls accumulated in f32.
            # Each tap is a statically shifted slice read straight out of the
            # halo buffer — no im2col staging copies.
            acc = None
            for k in range(K):
                shift = (K - 1 - k) * dil
                start = halo - shift
                tap = src_ref[:, start:start + T_pad, :].reshape(M, cp)
                part = jnp.dot(tap.astype(jnp.bfloat16), w_ref[li * K + k],
                               preferred_element_type=jnp.float32)
                acc = part if acc is None else acc + part
            return acc + bias_ref[li]          # (1, cp) bias, broadcast add

        for li, (dil, ds_slot) in enumerate(block_cfgs):
            # conv1 -> chomp -> relu -> (dropout = identity, inference)
            y = jnp.maximum(causal_conv(abuf_ref, w1_ref, b1_ref, li, dil), 0.0)
            bbuf_ref[:, halo:, :] = y.reshape(Bt, T_pad, cp)
            # conv2 -> chomp -> relu
            y = jnp.maximum(causal_conv(bbuf_ref, w2_ref, b2_ref, li, dil), 0.0)
            # residual (1x1 downsample when channel count changed)
            h = abuf_ref[:, halo:, :].reshape(M, cp)
            if ds_slot is not None:            # static python check
                res = (jnp.dot(h.astype(jnp.bfloat16), wd_ref[ds_slot],
                               preferred_element_type=jnp.float32)
                       + bd_ref[ds_slot])
            else:
                res = h
            h_new = jnp.maximum(y + res, 0.0)
            if li < n_blocks - 1:
                abuf_ref[:, halo:, :] = h_new.reshape(Bt, T_pad, cp)
            else:
                flat_ref[...] = h_new          # 2-D staging for strided gather

        # fc head: gather the last REAL timestep of every sample with a strided
        # sublane read, then ONE (Bt, cp) @ (cp, LANE) matmul.
        last = flat_ref[pl.ds(T_real - 1, Bt, stride=T_pad), :]
        out = (jnp.dot(last.astype(jnp.bfloat16), fcw_ref[...],
                       preferred_element_type=jnp.float32)
               + fcb_ref[...])
        o_ref[...] = out.astype(o_ref.dtype)

    return kernel


# ----------------------------------------------------------------------------
# Wrapper
# ----------------------------------------------------------------------------
def tcn_regressor_pallas(x, params, *, kernel_size):
    """x: (batch, seq_len, input_size)  ->  (batch, 1)"""
    batch, T, c_in0 = x.shape
    K = kernel_size
    blocks = params["blocks"]
    n_blocks = len(blocks)
    n_ds = sum(1 for blk in blocks if "wd" in blk)

    chans = [c_in0] + [int(blk["w1"].shape[-1]) for blk in blocks]
    CP = _round_up(max(chans), LANE)           # common padded channel width
    T_pad = _round_up(T, SUB)
    max_recep = (K - 1) * (2 ** (n_blocks - 1))
    HALO = _round_up(max(max_recep, 1), SUB)

    # --- batch blocking (Bt samples per grid step, sublane-aligned) ----------
    def vmem_bytes(bt):
        f32, bf16 = 4, 2
        return (2 * bt * T_pad * CP * f32              # x double buffer
                + 2 * bt * LANE * f32                  # out double buffer
                + 2 * bt * (HALO + T_pad) * CP * f32   # A/B halo scratch
                + bt * T_pad * CP * f32                # gather scratch
                + 2 * n_blocks * K * CP * CP * bf16    # conv weights
                + n_ds * CP * CP * bf16                # downsample weights
                + (2 * n_blocks + n_ds) * CP * f32     # biases
                + CP * LANE * bf16 + LANE * f32)       # fc head

    VMEM_BUDGET = 40 * 1024 * 1024                     # safe on v7x (64 MiB/TC)
    Bt = min(_round_up(batch, SUB), 32)
    while Bt > SUB and vmem_bytes(Bt) > VMEM_BUDGET:
        Bt -= SUB
    batch_pad = _round_up(batch, Bt)
    need = vmem_bytes(Bt)
    vmem_limit = int(min(max(need + need // 4 + (8 << 20), 32 << 20), 56 << 20))

    # --- pad input: batch -> Bt multiple, time -> 8, channels -> CP ----------
    xp = jnp.pad(x.astype(jnp.float32),
                 ((0, batch_pad - batch), (0, T_pad - T), (0, CP - c_in0)))

    # --- pack per-block weights into a handful of stacked operands -----------
    w1_l, b1_l, w2_l, b2_l, wd_l, bd_l = [], [], [], [], [], []
    block_cfgs = []
    c_prev = c_in0
    for i, blk in enumerate(blocks):
        dil = 2 ** i
        c_out = int(blk["w1"].shape[-1])

        def pad_w(w, ci, co):
            return jnp.pad(w, ((0, 0), (0, CP - ci), (0, CP - co)))   # (K,CP,CP)

        def pad_b(b, co):
            return jnp.pad(b, ((0, 0), (0, CP - co)))                 # (1,CP)

        w1_l.append(pad_w(blk["w1"], c_prev, c_out))
        b1_l.append(pad_b(blk["b1"], c_out))
        w2_l.append(pad_w(blk["w2"], c_out, c_out))
        b2_l.append(pad_b(blk["b2"], c_out))
        ds_slot = None
        if "wd" in blk:                        # structural (static) check
            ds_slot = len(wd_l)
            wd_l.append(jnp.pad(blk["wd"], ((0, CP - c_prev), (0, CP - c_out))))
            bd_l.append(pad_b(blk["bd"], c_out))
        block_cfgs.append((dil, ds_slot))
        c_prev = c_out

    w1_all = jnp.concatenate(w1_l, axis=0).astype(jnp.bfloat16)  # (n*K, CP, CP)
    w2_all = jnp.concatenate(w2_l, axis=0).astype(jnp.bfloat16)
    b1_all = jnp.stack(b1_l, axis=0)                             # (n, 1, CP) f32
    b2_all = jnp.stack(b2_l, axis=0)
    has_ds = len(wd_l) > 0

    out_dim = int(params["fc_w"].shape[-1])    # = 1 (out_dim <= 128 assumed)
    fcw = jnp.pad(params["fc_w"],
                  ((0, CP - c_prev), (0, LANE - out_dim))).astype(jnp.bfloat16)
    fcb = jnp.pad(params["fc_b"], ((0, 0), (0, LANE - out_dim)))

    flat_inputs = [xp, w1_all, b1_all, w2_all, b2_all]
    if has_ds:
        flat_inputs += [jnp.stack(wd_l, axis=0).astype(jnp.bfloat16),
                        jnp.stack(bd_l, axis=0)]
    flat_inputs += [fcw, fcb]

    kernel = _make_fused_kernel(tuple(block_cfgs), K, Bt, T, T_pad, HALO, CP,
                                has_ds)

    in_specs = [pl.BlockSpec((Bt, T_pad, CP), lambda b: (b, 0, 0))]
    in_specs += [_const_spec(a.shape) for a in flat_inputs[1:]]

    out = pl.pallas_call(
        kernel,
        out_shape=jax.ShapeDtypeStruct((batch_pad, LANE), jnp.float32),
        grid=(batch_pad // Bt,),
        in_specs=in_specs,
        out_specs=pl.BlockSpec((Bt, LANE), lambda b: (b, 0)),
        scratch_shapes=[
            pltpu.VMEM((Bt, HALO + T_pad, CP), jnp.float32),   # A halo buffer
            pltpu.VMEM((Bt, HALO + T_pad, CP), jnp.float32),   # B halo buffer
            pltpu.VMEM((Bt * T_pad, CP), jnp.float32),         # last-step gather
        ],
        compiler_params=pltpu.CompilerParams(
            dimension_semantics=("parallel",),                 # megacore on v7x
            vmem_limit_bytes=vmem_limit,
        ),
    )(*flat_inputs)

    return out[:batch, :out_dim]                               # (batch, 1)


# ----------------------------------------------------------------------------
# Params (arrays only — no python bools in the traced pytree)
# ----------------------------------------------------------------------------
def init_params(key, input_size, tcn_channels, kernel_size):
    blocks = []
    c_in = input_size
    for i, c_out in enumerate(tcn_channels):
        keys = jax.random.split(jax.random.fold_in(key, i), 6)
        blk = {
            "w1": 0.1 * jax.random.normal(keys[0], (kernel_size, c_in, c_out), jnp.float32),
            "b1": 0.1 * jax.random.normal(keys[1], (1, c_out), jnp.float32),
            "w2": 0.1 * jax.random.normal(keys[2], (kernel_size, c_out, c_out), jnp.float32),
            "b2": 0.1 * jax.random.normal(keys[3], (1, c_out), jnp.float32),
        }
        if c_in != c_out:                                   # downsample conv 1x1
            blk["wd"] = 0.1 * jax.random.normal(keys[4], (c_in, c_out), jnp.float32)
            blk["bd"] = 0.1 * jax.random.normal(keys[5], (1, c_out), jnp.float32)
        blocks.append(blk)
        c_in = c_out
    fk = jax.random.split(jax.random.fold_in(key, 1000), 2)
    return {
        "blocks": blocks,
        "fc_w": 0.1 * jax.random.normal(fk[0], (tcn_channels[-1], 1), jnp.float32),
        "fc_b": 0.1 * jax.random.normal(fk[1], (1, 1), jnp.float32),
    }


# ----------------------------------------------------------------------------
# Pure-JAX reference (matmul operands rounded to bf16 to match kernel MXU inputs)
# ----------------------------------------------------------------------------
def tcn_regressor_ref(x, params, *, kernel_size):
    def q(a):
        return a.astype(jnp.bfloat16).astype(jnp.float32)

    h = x.astype(jnp.float32)
    for i, blk in enumerate(params["blocks"]):
        d = 2 ** i

        def cconv(inp, w, b, _d=d):
            B, T, _ = inp.shape
            co = w.shape[-1]
            out = jnp.zeros((B, T, co), jnp.float32)
            for k in range(kernel_size):
                s = (kernel_size - 1 - k) * _d
                xs = jnp.pad(inp, ((0, 0), (s, 0), (0, 0)))[:, :T, :]
                out = out + jnp.einsum("btc,co->bto", q(xs), q(w[k]))
            return out + b

        y = jax.nn.relu(cconv(h, blk["w1"], blk["b1"]))
        y = jax.nn.relu(cconv(y, blk["w2"], blk["b2"]))
        if "wd" in blk:
            res = jnp.einsum("btc,co->bto", q(h), q(blk["wd"])) + blk["bd"]
        else:
            res = h
        h = jax.nn.relu(y + res)
    last = h[:, -1, :]
    return q(last) @ q(params["fc_w"]) + params["fc_b"]


# ----------------------------------------------------------------------------
if __name__ == "__main__":
    batch, seq_len, input_size = 2, 16, 4
    tcn_channels = [8, 8]
    kernel_size = 2

    key = jax.random.PRNGKey(0)
    x = jax.random.normal(jax.random.fold_in(key, 7),
                          (batch, seq_len, input_size), dtype=jnp.float32)
    params = init_params(key, input_size, tcn_channels, kernel_size)

    fwd = jax.jit(functools.partial(tcn_regressor_pallas, kernel_size=kernel_size))
    out = jax.block_until_ready(fwd(x, params))

    ref = tcn_regressor_ref(x, params, kernel_size=kernel_size)
    assert out.shape == (batch, 1), out.shape
    assert jnp.allclose(out, ref, atol=1e-3, rtol=1e-3), (out, ref)

    print("KERNEL_OK")
</pallas_src>

<mosaic_0001>
module attributes {stable_mosaic.version = 11 : i64} {
  func.func @kernel(%arg0: i32, %arg1: memref<8x16x128xf32, #tpu.memory_space<vmem>>, %arg2: memref<4x128x128xbf16, #tpu.memory_space<vmem>>, %arg3: memref<2x1x128xf32, #tpu.memory_space<vmem>>, %arg4: memref<4x128x128xbf16, #tpu.memory_space<vmem>>, %arg5: memref<2x1x128xf32, #tpu.memory_space<vmem>>, %arg6: memref<1x128x128xbf16, #tpu.memory_space<vmem>>, %arg7: memref<1x1x128xf32, #tpu.memory_space<vmem>>, %arg8: memref<128x128xbf16, #tpu.memory_space<vmem>>, %arg9: memref<1x128xf32, #tpu.memory_space<vmem>>, %arg10: memref<8x128xf32, #tpu.memory_space<vmem>>, %arg11: memref<8x24x128xf32, #tpu.memory_space<vmem>>, %arg12: memref<8x24x128xf32, #tpu.memory_space<vmem>>, %arg13: memref<128x128xf32, #tpu.memory_space<vmem>>) attributes {dimension_semantics = [#tpu.dimension_semantics<parallel>], iteration_bounds = array<i64: 1>, scalar_prefetch = 0 : i64, scratch_operands = 3 : i64, tpu.core_type = #tpu.core_type<tc>, window_params = [{transform_indices = @transform_0, window_bounds = array<i64: 8, 16, 128>}, {pipeline_mode = #tpu.pipeline_mode<synchronous>, transform_indices = @transform_1, window_bounds = array<i64: 4, 128, 128>}, {pipeline_mode = #tpu.pipeline_mode<synchronous>, transform_indices = @transform_2, window_bounds = array<i64: 2, 1, 128>}, {pipeline_mode = #tpu.pipeline_mode<synchronous>, transform_indices = @transform_3, window_bounds = array<i64: 4, 128, 128>}, {pipeline_mode = #tpu.pipeline_mode<synchronous>, transform_indices = @transform_4, window_bounds = array<i64: 2, 1, 128>}, {pipeline_mode = #tpu.pipeline_mode<synchronous>, transform_indices = @transform_5, window_bounds = array<i64: 1, 128, 128>}, {pipeline_mode = #tpu.pipeline_mode<synchronous>, transform_indices = @transform_6, window_bounds = array<i64: 1, 1, 128>}, {pipeline_mode = #tpu.pipeline_mode<synchronous>, transform_indices = @transform_7, window_bounds = array<i64: 128, 128>}, {pipeline_mode = #tpu.pipeline_mode<synchronous>, transform_indices = @transform_8, window_bounds = array<i64: 1, 128>}, {transform_indices = @transform_9, window_bounds = array<i64: 8, 128>}]} {
    %cst = arith.constant 0.000000e+00 : f32
    %0 = vector.broadcast %cst : f32 to vector<8x8x128xf32>
    %c0 = arith.constant 0 : index
    %c0_0 = arith.constant 0 : index
    %c0_1 = arith.constant 0 : index
    %1 = vector.load %arg11[%c0, %c0_0, %c0_1] : memref<8x24x128xf32, #tpu.memory_space<vmem>>, vector<8x8x128xf32>
    tpu.vector_store %arg11[%c0, %c0_0, %c0_1], %0 {strides = array<i32>} : memref<8x24x128xf32, #tpu.memory_space<vmem>>, vector<8x8x128xf32>,
    %c0_2 = arith.constant 0 : index
    %c0_3 = arith.constant 0 : index
    %c0_4 = arith.constant 0 : index
    %2 = vector.load %arg12[%c0_2, %c0_3, %c0_4] : memref<8x24x128xf32, #tpu.memory_space<vmem>>, vector<8x8x128xf32>
    tpu.vector_store %arg12[%c0_2, %c0_3, %c0_4], %0 {strides = array<i32>} : memref<8x24x128xf32, #tpu.memory_space<vmem>>, vector<8x8x128xf32>,
    %c0_5 = arith.constant 0 : index
    %c0_6 = arith.constant 0 : index
    %c0_7 = arith.constant 0 : index
    %3 = vector.load %arg1[%c0_5, %c0_6, %c0_7] : memref<8x16x128xf32, #tpu.memory_space<vmem>>, vector<8x16x128xf32>
    %c0_8 = arith.constant 0 : index
    %c8 = arith.constant 8 : index
    %c0_9 = arith.constant 0 : index
    %4 = vector.load %arg11[%c0_8, %c8, %c0_9] : memref<8x24x128xf32, #tpu.memory_space<vmem>>, vector<8x16x128xf32>
    tpu.vector_store %arg11[%c0_8, %c8, %c0_9], %3 {strides = array<i32>} : memref<8x24x128xf32, #tpu.memory_space<vmem>>, vector<8x16x128xf32>,
    %c0_10 = arith.constant 0 : index
    %c7 = arith.constant 7 : index
    %c0_11 = arith.constant 0 : index
    %5 = vector.load %arg11[%c0_10, %c7, %c0_11] : memref<8x24x128xf32, #tpu.memory_space<vmem>>, vector<8x16x128xf32>
    %6 = vector.shape_cast %5 : vector<8x16x128xf32> to vector<128x128xf32>
    %7 = arith.truncf %6 : vector<128x128xf32> to vector<128x128xbf16>
    %c0_12 = arith.constant 0 : index
    %c0_13 = arith.constant 0 : index
    %c0_14 = arith.constant 0 : index
    %8 = vector.load %arg2[%c0_12, %c0_13, %c0_14] : memref<4x128x128xbf16, #tpu.memory_space<vmem>>, vector<1x128x128xbf16>
    %9 = vector.shape_cast %8 : vector<1x128x128xbf16> to vector<128x128xbf16>
    %cst_15 = arith.constant dense<0.000000e+00> : vector<128x128xf32>
    %10 = tpu.matmul %7, %9, %cst_15 {dimension_numbers = #tpu.dot_dimension_numbers<[1], [0], [0], [1], [0, 0, 1, 1], [], []>} : vector<128x128xbf16>, vector<128x128xbf16>, vector<128x128xf32> -> vector<128x128xf32>
    %c0_16 = arith.constant 0 : index
    %c8_17 = arith.constant 8 : index
    %c0_18 = arith.constant 0 : index
    %11 = vector.load %arg11[%c0_16, %c8_17, %c0_18] : memref<8x24x128xf32, #tpu.memory_space<vmem>>, vector<8x16x128xf32>
    %12 = vector.shape_cast %11 : vector<8x16x128xf32> to vector<128x128xf32>
    %13 = arith.truncf %12 : vector<128x128xf32> to vector<128x128xbf16>
    %c1 = arith.constant 1 : index
    %c0_19 = arith.constant 0 : index
    %c0_20 = arith.constant 0 : index
    %14 = vector.load %arg2[%c1, %c0_19, %c0_20] : memref<4x128x128xbf16, #tpu.memory_space<vmem>>, vector<1x128x128xbf16>
    %15 = vector.shape_cast %14 : vector<1x128x128xbf16> to vector<128x128xbf16>
    %cst_21 = arith.constant dense<0.000000e+00> : vector<128x128xf32>
    %16 = tpu.matmul %13, %15, %cst_21 {dimension_numbers = #tpu.dot_dimension_numbers<[1], [0], [0], [1], [0, 0, 1, 1], [], []>} : vector<128x128xbf16>, vector<128x128xbf16>, vector<128x128xf32> -> vector<128x128xf32>
    %17 = arith.addf %10, %16 : vector<128x128xf32>
    %c0_22 = arith.constant 0 : index
    %c0_23 = arith.constant 0 : index
    %c0_24 = arith.constant 0 : index
    %18 = vector.load %arg3[%c0_22, %c0_23, %c0_24] : memref<2x1x128xf32, #tpu.memory_space<vmem>>, vector<1x1x128xf32>
    %19 = vector.shape_cast %18 : vector<1x1x128xf32> to vector<1x128xf32>
    %20 = vector.broadcast %19 : vector<1x128xf32> to vector<128x128xf32>
    %21 = arith.addf %17, %20 : vector<128x128xf32>
    %cst_25 = arith.constant 0.000000e+00 : f32
    %22 = vector.broadcast %cst_25 : f32 to vector<128x128xf32>
    %23 = arith.maximumf %21, %22 : vector<128x128xf32>
    %24 = vector.shape_cast %23 : vector<128x128xf32> to vector<8x16x128xf32>
    %c0_26 = arith.constant 0 : index
    %c8_27 = arith.constant 8 : index
    %c0_28 = arith.constant 0 : index
    %25 = vector.load %arg12[%c0_26, %c8_27, %c0_28] : memref<8x24x128xf32, #tpu.memory_space<vmem>>, vector<8x16x128xf32>
    tpu.vector_store %arg12[%c0_26, %c8_27, %c0_28], %24 {strides = array<i32>} : memref<8x24x128xf32, #tpu.memory_space<vmem>>, vector<8x16x128xf32>,
    %c0_29 = arith.constant 0 : index
    %c7_30 = arith.constant 7 : index
    %c0_31 = arith.constant 0 : index
    %26 = vector.load %arg12[%c0_29, %c7_30, %c0_31] : memref<8x24x128xf32, #tpu.memory_space<vmem>>, vector<8x16x128xf32>
    %27 = vector.shape_cast %26 : vector<8x16x128xf32> to vector<128x128xf32>
    %28 = arith.truncf %27 : vector<128x128xf32> to vector<128x128xbf16>
    %c0_32 = arith.constant 0 : index
    %c0_33 = arith.constant 0 : index
    %c0_34 = arith.constant 0 : index
    %29 = vector.load %arg4[%c0_32, %c0_33, %c0_34] : memref<4x128x128xbf16, #tpu.memory_space<vmem>>, vector<1x128x128xbf16>
    %30 = vector.shape_cast %29 : vector<1x128x128xbf16> to vector<128x128xbf16>
    %cst_35 = arith.constant dense<0.000000e+00> : vector<128x128xf32>
    %31 = tpu.matmul %28, %30, %cst_35 {dimension_numbers = #tpu.dot_dimension_numbers<[1], [0], [0], [1], [0, 0, 1, 1], [], []>} : vector<128x128xbf16>, vector<128x128xbf16>, vector<128x128xf32> -> vector<128x128xf32>
    %c0_36 = arith.constant 0 : index
    %c8_37 = arith.constant 8 : index
    %c0_38 = arith.constant 0 : index
    %32 = vector.load %arg12[%c0_36, %c8_37, %c0_38] : memref<8x24x128xf32, #tpu.memory_space<vmem>>, vector<8x16x128xf32>
    %33 = vector.shape_cast %32 : vector<8x16x128xf32> to vector<128x128xf32>
    %34 = arith.truncf %33 : vector<128x128xf32> to vector<128x128xbf16>
    %c1_39 = arith.constant 1 : index
    %c0_40 = arith.constant 0 : index
    %c0_41 = arith.constant 0 : index
    %35 = vector.load %arg4[%c1_39, %c0_40, %c0_41] : memref<4x128x128xbf16, #tpu.memory_space<vmem>>, vector<1x128x128xbf16>
    %36 = vector.shape_cast %35 : vector<1x128x128xbf16> to vector<128x128xbf16>
    %cst_42 = arith.constant dense<0.000000e+00> : vector<128x128xf32>
    %37 = tpu.matmul %34, %36, %cst_42 {dimension_numbers = #tpu.dot_dimension_numbers<[1], [0], [0], [1], [0, 0, 1, 1], [], []>} : vector<128x128xbf16>, vector<128x128xbf16>, vector<128x128xf32> -> vector<128x128xf32>
    %38 = arith.addf %31, %37 : vector<128x128xf32>
    %c0_43 = arith.constant 0 : index
    %c0_44 = arith.constant 0 : index
    %c0_45 = arith.constant 0 : index
    %39 = vector.load %arg5[%c0_43, %c0_44, %c0_45] : memref<2x1x128xf32, #tpu.memory_space<vmem>>, vector<1x1x128xf32>
    %40 = vector.shape_cast %39 : vector<1x1x128xf32> to vector<1x128xf32>
    %41 = vector.broadcast %40 : vector<1x128xf32> to vector<128x128xf32>
    %42 = arith.addf %38, %41 : vector<128x128xf32>
    %cst_46 = arith.constant 0.000000e+00 : f32
    %43 = vector.broadcast %cst_46 : f32 to vector<128x128xf32>
    %44 = arith.maximumf %42, %43 : vector<128x128xf32>
    %c0_47 = arith.constant 0 : index
    %c8_48 = arith.constant 8 : index
    %c0_49 = arith.constant 0 : index
    %45 = vector.load %arg11[%c0_47, %c8_48, %c0_49] : memref<8x24x128xf32, #tpu.memory_space<vmem>>, vector<8x16x128xf32>
    %46 = vector.shape_cast %45 : vector<8x16x128xf32> to vector<128x128xf32>
    %47 = arith.truncf %46 : vector<128x128xf32> to vector<128x128xbf16>
    %c0_50 = arith.constant 0 : index
    %c0_51 = arith.constant 0 : index
    %c0_52 = arith.constant 0 : index
    %48 = vector.load %arg6[%c0_50, %c0_51, %c0_52] : memref<1x128x128xbf16, #tpu.memory_space<vmem>>, vector<1x128x128xbf16>
    %49 = vector.shape_cast %48 : vector<1x128x128xbf16> to vector<128x128xbf16>
    %cst_53 = arith.constant dense<0.000000e+00> : vector<128x128xf32>
    %50 = tpu.matmul %47, %49, %cst_53 {dimension_numbers = #tpu.dot_dimension_numbers<[1], [0], [0], [1], [0, 0, 1, 1], [], []>} : vector<128x128xbf16>, vector<128x128xbf16>, vector<128x128xf32> -> vector<128x128xf32>
    %c0_54 = arith.constant 0 : index
    %c0_55 = arith.constant 0 : index
    %c0_56 = arith.constant 0 : index
    %51 = vector.load %arg7[%c0_54, %c0_55, %c0_56] : memref<1x1x128xf32, #tpu.memory_space<vmem>>, vector<1x1x128xf32>
    %52 = vector.shape_cast %51 : vector<1x1x128xf32> to vector<1x128xf32>
    %53 = vector.broadcast %52 : vector<1x128xf32> to vector<128x128xf32>
    %54 = arith.addf %50, %53 : vector<128x128xf32>
    %55 = arith.addf %44, %54 : vector<128x128xf32>
    %cst_57 = arith.constant 0.000000e+00 : f32
    %56 = vector.broadcast %cst_57 : f32 to vector<128x128xf32>
    %57 = arith.maximumf %55, %56 : vector<128x128xf32>
    %58 = vector.shape_cast %57 : vector<128x128xf32> to vector<8x16x128xf32>
    %c0_58 = arith.constant 0 : index
    %c8_59 = arith.constant 8 : index
    %c0_60 = arith.constant 0 : index
    %59 = vector.load %arg11[%c0_58, %c8_59, %c0_60] : memref<8x24x128xf32, #tpu.memory_space<vmem>>, vector<8x16x128xf32>
    tpu.vector_store %arg11[%c0_58, %c8_59, %c0_60], %58 {strides = array<i32>} : memref<8x24x128xf32, #tpu.memory_space<vmem>>, vector<8x16x128xf32>,
    %c0_61 = arith.constant 0 : index
    %c6 = arith.constant 6 : index
    %c0_62 = arith.constant 0 : index
    %60 = vector.load %arg11[%c0_61, %c6, %c0_62] : memref<8x24x128xf32, #tpu.memory_space<vmem>>, vector<8x16x128xf32>
    %61 = vector.shape_cast %60 : vector<8x16x128xf32> to vector<128x128xf32>
    %62 = arith.truncf %61 : vector<128x128xf32> to vector<128x128xbf16>
    %c2 = arith.constant 2 : index
    %c0_63 = arith.constant 0 : index
    %c0_64 = arith.constant 0 : index
    %63 = vector.load %arg2[%c2, %c0_63, %c0_64] : memref<4x128x128xbf16, #tpu.memory_space<vmem>>, vector<1x128x128xbf16>
    %64 = vector.shape_cast %63 : vector<1x128x128xbf16> to vector<128x128xbf16>
    %cst_65 = arith.constant dense<0.000000e+00> : vector<128x128xf32>
    %65 = tpu.matmul %62, %64, %cst_65 {dimension_numbers = #tpu.dot_dimension_numbers<[1], [0], [0], [1], [0, 0, 1, 1], [], []>} : vector<128x128xbf16>, vector<128x128xbf16>, vector<128x128xf32> -> vector<128x128xf32>
    %c0_66 = arith.constant 0 : index
    %c8_67 = arith.constant 8 : index
    %c0_68 = arith.constant 0 : index
    %66 = vector.load %arg11[%c0_66, %c8_67, %c0_68] : memref<8x24x128xf32, #tpu.memory_space<vmem>>, vector<8x16x128xf32>
    %67 = vector.shape_cast %66 : vector<8x16x128xf32> to vector<128x128xf32>
    %68 = arith.truncf %67 : vector<128x128xf32> to vector<128x128xbf16>
    %c3 = arith.constant 3 : index
    %c0_69 = arith.constant 0 : index
    %c0_70 = arith.constant 0 : index
    %69 = vector.load %arg2[%c3, %c0_69, %c0_70] : memref<4x128x128xbf16, #tpu.memory_space<vmem>>, vector<1x128x128xbf16>
    %70 = vector.shape_cast %69 : vector<1x128x128xbf16> to vector<128x128xbf16>
    %cst_71 = arith.constant dense<0.000000e+00> : vector<128x128xf32>
    %71 = tpu.matmul %68, %70, %cst_71 {dimension_numbers = #tpu.dot_dimension_numbers<[1], [0], [0], [1], [0, 0, 1, 1], [], []>} : vector<128x128xbf16>, vector<128x128xbf16>, vector<128x128xf32> -> vector<128x128xf32>
    %72 = arith.addf %65, %71 : vector<128x128xf32>
    %c1_72 = arith.constant 1 : index
    %c0_73 = arith.constant 0 : index
    %c0_74 = arith.constant 0 : index
    %73 = vector.load %arg3[%c1_72, %c0_73, %c0_74] : memref<2x1x128xf32, #tpu.memory_space<vmem>>, vector<1x1x128xf32>
    %74 = vector.shape_cast %73 : vector<1x1x128xf32> to vector<1x128xf32>
    %75 = vector.broadcast %74 : vector<1x128xf32> to vector<128x128xf32>
    %76 = arith.addf %72, %75 : vector<128x128xf32>
    %cst_75 = arith.constant 0.000000e+00 : f32
    %77 = vector.broadcast %cst_75 : f32 to vector<128x128xf32>
    %78 = arith.maximumf %76, %77 : vector<128x128xf32>
    %79 = vector.shape_cast %78 : vector<128x128xf32> to vector<8x16x128xf32>
    %c0_76 = arith.constant 0 : index
    %c8_77 = arith.constant 8 : index
    %c0_78 = arith.constant 0 : index
    %80 = vector.load %arg12[%c0_76, %c8_77, %c0_78] : memref<8x24x128xf32, #tpu.memory_space<vmem>>, vector<8x16x128xf32>
    tpu.vector_store %arg12[%c0_76, %c8_77, %c0_78], %79 {strides = array<i32>} : memref<8x24x128xf32, #tpu.memory_space<vmem>>, vector<8x16x128xf32>,
    %c0_79 = arith.constant 0 : index
    %c6_80 = arith.constant 6 : index
    %c0_81 = arith.constant 0 : index
    %81 = vector.load %arg12[%c0_79, %c6_80, %c0_81] : memref<8x24x128xf32, #tpu.memory_space<vmem>>, vector<8x16x128xf32>
    %82 = vector.shape_cast %81 : vector<8x16x128xf32> to vector<128x128xf32>
    %83 = arith.truncf %82 : vector<128x128xf32> to vector<128x128xbf16>
    %c2_82 = arith.constant 2 : index
    %c0_83 = arith.constant 0 : index
    %c0_84 = arith.constant 0 : index
    %84 = vector.load %arg4[%c2_82, %c0_83, %c0_84] : memref<4x128x128xbf16, #tpu.memory_space<vmem>>, vector<1x128x128xbf16>
    %85 = vector.shape_cast %84 : vector<1x128x128xbf16> to vector<128x128xbf16>
    %cst_85 = arith.constant dense<0.000000e+00> : vector<128x128xf32>
    %86 = tpu.matmul %83, %85, %cst_85 {dimension_numbers = #tpu.dot_dimension_numbers<[1], [0], [0], [1], [0, 0, 1, 1], [], []>} : vector<128x128xbf16>, vector<128x128xbf16>, vector<128x128xf32> -> vector<128x128xf32>
    %c0_86 = arith.constant 0 : index
    %c8_87 = arith.constant 8 : index
    %c0_88 = arith.constant 0 : index
    %87 = vector.load %arg12[%c0_86, %c8_87, %c0_88] : memref<8x24x128xf32, #tpu.memory_space<vmem>>, vector<8x16x128xf32>
    %88 = vector.shape_cast %87 : vector<8x16x128xf32> to vector<128x128xf32>
    %89 = arith.truncf %88 : vector<128x128xf32> to vector<128x128xbf16>
    %c3_89 = arith.constant 3 : index
    %c0_90 = arith.constant 0 : index
    %c0_91 = arith.constant 0 : index
    %90 = vector.load %arg4[%c3_89, %c0_90, %c0_91] : memref<4x128x128xbf16, #tpu.memory_space<vmem>>, vector<1x128x128xbf16>
    %91 = vector.shape_cast %90 : vector<1x128x128xbf16> to vector<128x128xbf16>
    %cst_92 = arith.constant dense<0.000000e+00> : vector<128x128xf32>
    %92 = tpu.matmul %89, %91, %cst_92 {dimension_numbers = #tpu.dot_dimension_numbers<[1], [0], [0], [1], [0, 0, 1, 1], [], []>} : vector<128x128xbf16>, vector<128x128xbf16>, vector<128x128xf32> -> vector<128x128xf32>
    %93 = arith.addf %86, %92 : vector<128x128xf32>
    %c1_93 = arith.constant 1 : index
    %c0_94 = arith.constant 0 : index
    %c0_95 = arith.constant 0 : index
    %94 = vector.load %arg5[%c1_93, %c0_94, %c0_95] : memref<2x1x128xf32, #tpu.memory_space<vmem>>, vector<1x1x128xf32>
    %95 = vector.shape_cast %94 : vector<1x1x128xf32> to vector<1x128xf32>
    %96 = vector.broadcast %95 : vector<1x128xf32> to vector<128x128xf32>
    %97 = arith.addf %93, %96 : vector<128x128xf32>
    %cst_96 = arith.constant 0.000000e+00 : f32
    %98 = vector.broadcast %cst_96 : f32 to vector<128x128xf32>
    %99 = arith.maximumf %97, %98 : vector<128x128xf32>
    %c0_97 = arith.constant 0 : index
    %c8_98 = arith.constant 8 : index
    %c0_99 = arith.constant 0 : index
    %100 = vector.load %arg11[%c0_97, %c8_98, %c0_99] : memref<8x24x128xf32, #tpu.memory_space<vmem>>, vector<8x16x128xf32>
    %101 = vector.shape_cast %100 : vector<8x16x128xf32> to vector<128x128xf32>
    %102 = arith.addf %99, %101 : vector<128x128xf32>
    %cst_100 = arith.constant 0.000000e+00 : f32
    %103 = vector.broadcast %cst_100 : f32 to vector<128x128xf32>
    %104 = arith.maximumf %102, %103 : vector<128x128xf32>
    %c0_101 = arith.constant 0 : index
    %c0_102 = arith.constant 0 : index
    %105 = vector.load %arg13[%c0_101, %c0_102] : memref<128x128xf32, #tpu.memory_space<vmem>>, vector<128x128xf32>
    tpu.vector_store %arg13[%c0_101, %c0_102], %104 {strides = array<i32>} : memref<128x128xf32, #tpu.memory_space<vmem>>, vector<128x128xf32>,
    %c15 = arith.constant 15 : index
    %c0_103 = arith.constant 0 : index
    %106 = tpu.strided_load %arg13[%c15, %c0_103] {strides = array<i32: 16, 1>} : memref<128x128xf32, #tpu.memory_space<vmem>>, vector<8x128xf32>
    %107 = arith.truncf %106 : vector<8x128xf32> to vector<8x128xbf16>
    %c0_104 = arith.constant 0 : index
    %c0_105 = arith.constant 0 : index
    %108 = vector.load %arg8[%c0_104, %c0_105] : memref<128x128xbf16, #tpu.memory_space<vmem>>, vector<128x128xbf16>
    %cst_106 = arith.constant dense<0.000000e+00> : vector<8x128xf32>
    %109 = tpu.matmul %107, %108, %cst_106 {dimension_numbers = #tpu.dot_dimension_numbers<[1], [0], [0], [1], [0, 0, 1, 1], [], []>} : vector<8x128xbf16>, vector<128x128xbf16>, vector<8x128xf32> -> vector<8x128xf32>
    %c0_107 = arith.constant 0 : index
    %c0_108 = arith.constant 0 : index
    %110 = vector.load %arg9[%c0_107, %c0_108] : memref<1x128xf32, #tpu.memory_space<vmem>>, vector<1x128xf32>
    %111 = vector.broadcast %110 : vector<1x128xf32> to vector<8x128xf32>
    %112 = arith.addf %109, %111 : vector<8x128xf32>
    %c0_109 = arith.constant 0 : index
    %c0_110 = arith.constant 0 : index
    %113 = vector.load %arg10[%c0_109, %c0_110] : memref<8x128xf32, #tpu.memory_space<vmem>>, vector<8x128xf32>
    tpu.vector_store %arg10[%c0_109, %c0_110], %112 {strides = array<i32>} : memref<8x128xf32, #tpu.memory_space<vmem>>, vector<8x128xf32>,
    return
  }
  func.func @transform_0(%arg0: i32) -> (i32, i32, i32) {
    %c0_i32 = arith.constant 0 : i32
    %c0_i32_0 = arith.constant 0 : i32
    %c0_i32_1 = arith.constant 0 : i32
    return %arg0, %c0_i32, %c0_i32_0 : i32, i32, i32
  }
  func.func @transform_1(%arg0: i32) -> (i32, i32, i32) {
    %c0_i32 = arith.constant 0 : i32
    %c0_i32_0 = arith.constant 0 : i32
    %c0_i32_1 = arith.constant 0 : i32
    %c0_i32_2 = arith.constant 0 : i32
    return %c0_i32, %c0_i32_0, %c0_i32_1 : i32, i32, i32
  }
  func.func @transform_2(%arg0: i32) -> (i32, i32, i32) {
    %c0_i32 = arith.constant 0 : i32
    %c0_i32_0 = arith.constant 0 : i32
    %c0_i32_1 = arith.constant 0 : i32
    %c0_i32_2 = arith.constant 0 : i32
    return %c0_i32, %c0_i32_0, %c0_i32_1 : i32, i32, i32
  }
  func.func @transform_3(%arg0: i32) -> (i32, i32, i32) {
    %c0_i32 = arith.constant 0 : i32
    %c0_i32_0 = arith.constant 0 : i32
    %c0_i32_1 = arith.constant 0 : i32
    %c0_i32_2 = arith.constant 0 : i32
    return %c0_i32, %c0_i32_0, %c0_i32_1 : i32, i32, i32
  }
  func.func @transform_4(%arg0: i32) -> (i32, i32, i32) {
    %c0_i32 = arith.constant 0 : i32
    %c0_i32_0 = arith.constant 0 : i32
    %c0_i32_1 = arith.constant 0 : i32
    %c0_i32_2 = arith.constant 0 : i32
    return %c0_i32, %c0_i32_0, %c0_i32_1 : i32, i32, i32
  }
  func.func @transform_5(%arg0: i32) -> (i32, i32, i32) {
    %c0_i32 = arith.constant 0 : i32
    %c0_i32_0 = arith.constant 0 : i32
    %c0_i32_1 = arith.constant 0 : i32
    %c0_i32_2 = arith.constant 0 : i32
    return %c0_i32, %c0_i32_0, %c0_i32_1 : i32, i32, i32
  }
  func.func @transform_6(%arg0: i32) -> (i32, i32, i32) {
    %c0_i32 = arith.constant 0 : i32
    %c0_i32_0 = arith.constant 0 : i32
    %c0_i32_1 = arith.constant 0 : i32
    %c0_i32_2 = arith.constant 0 : i32
    return %c0_i32, %c0_i32_0, %c0_i32_1 : i32, i32, i32
  }
  func.func @transform_7(%arg0: i32) -> (i32, i32) {
    %c0_i32 = arith.constant 0 : i32
    %c0_i32_0 = arith.constant 0 : i32
    %c0_i32_1 = arith.constant 0 : i32
    return %c0_i32, %c0_i32_0 : i32, i32
  }
  func.func @transform_8(%arg0: i32) -> (i32, i32) {
    %c0_i32 = arith.constant 0 : i32
    %c0_i32_0 = arith.constant 0 : i32
    %c0_i32_1 = arith.constant 0 : i32
    return %c0_i32, %c0_i32_0 : i32, i32
  }
  func.func @transform_9(%arg0: i32) -> (i32, i32) {
    %c0_i32 = arith.constant 0 : i32
    %c0_i32_0 = arith.constant 0 : i32
    return %arg0, %c0_i32 : i32, i32
  }
}

</mosaic_0001>

<bundles_post_ra>
// kernel: tcn_regressor_pallas.1
= control target key start
LH: loop header
LB: loop body
LE: loop exit
PB: predicated region body
PF: predicated region fallthrough
CT: control target
= control target key end

     0   :  { %v2978_v1 = vmov 0.0   ;;  %vm2979_vm0 = vmmov 0   ;;  %s3535_s1 = inlined_call_operand.vmem [shape: bf16[4,128,128], index: 1, kind: input, shape index: {}]   ;;  %s3536_s0 = inlined_call_operand.vmem [shape: f32[8,16,128], index: 0, kind: input, shape index: {}]   ;;  %s3537_s3 = inlined_call_operand.vmem [shape: bf16[4,128,128], index: 3, kind: input, shape index: {}]   ;;  %s3538_s5 = inlined_call_operand.vmem [shape: bf16[1,128,128], index: 5, kind: input, shape index: {}]   ;;  %s3539_s2 = inlined_call_operand.vmem [shape: f32[2,1,128], index: 2, kind: input, shape index: {}]   ;;  %s3540_s4 = inlined_call_operand.vmem [shape: f32[2,1,128], index: 4, kind: input, shape index: {}]   ;;  %s3541_s6 = inlined_call_operand.vmem [shape: f32[1,1,128], index: 6, kind: input, shape index: {}]   ;;  %s3542_s7 = inlined_call_operand.vmem [shape: bf16[128,128], index: 7, kind: input, shape index: {}]   ;;  %s3543_s8 = inlined_call_operand.vmem [shape: f32[1,128], index: 8, kind: input, shape index: {}]   ;;  %s3544_s9 = inlined_call_operand.vmem [shape: f32[8,128], index: 9, kind: output, shape index: {}]  }
   0x1   :  { %v2897_v0 = vld [vmem:[%s3535_s1 + $0x40] sm:$0xff]   ;;  %33 = vst [vmem:[#allocation2] sm:$0xff] %v2978_v1  ;;  %34 = vst [vmem:[#allocation2 + $0x18] sm:$0xff] %v2978_v1  ;;  %v2898_v2 = vld [vmem:[%s3535_s1 + $0x48] sm:$0xff]  }
   0x2   :  { %35 = vst [vmem:[#allocation2 + $0x30] sm:$0xff] %v2978_v1  ;;  %36 = vst [vmem:[#allocation2 + $0x48] sm:$0xff] %v2978_v1  ;;  %2523 = vmatprep.subr.bf16.mxu0 %v2897_v0  ;;  %v2899_v3 = vld [vmem:[%s3535_s1 + $0x50] sm:$0xff]   ;;  %v2900_v4 = vld [vmem:[%s3535_s1 + $0x58] sm:$0xff]  }
   0x3   :  { %37 = vst [vmem:[#allocation2 + $0x60] sm:$0xff] %v2978_v1  ;;  %38 = vst [vmem:[#allocation2 + $0x78] sm:$0xff] %v2978_v1  ;;  %2524 = vmatpush3.bf16.msra.mxu0 %v2897_v0  ;;  %v49_v5 = vld [vmem:[%s3536_s0] sm:$0xff]  ;;  %v50_v6 = vld [vmem:[%s3536_s0 + $0x8] sm:$0xff] }
   0x4   :  { %39 = vst [vmem:[#allocation2 + $0x90] sm:$0xff] %v2978_v1  ;;  %40 = vst [vmem:[#allocation2 + $0xa8] sm:$0xff] %v2978_v1  ;;  %2525 = vmatprep.subr.bf16.mxu0 %v2898_v2  ;;  %v51_v7 = vld [vmem:[%s3536_s0 + $0x10] sm:$0xff]  ;;  %v3051_v8 = vpack.c.bf16 %v50_v6, %v49_v5  ;;  %v52_v9 = vld [vmem:[%s3536_s0 + $0x18] sm:$0xff] }
   0x5   :  { %41 = vst [vmem:[#allocation3] sm:$0xff] %v2978_v1  ;;  %42 = vst [vmem:[#allocation3 + $0x18] sm:$0xff] %v2978_v1  ;;  %v2901_v10 = vld [vmem:[%s3535_s1 + $0x60] sm:$0xff]   ;;  %v54_v12 = vld [vmem:[%s3536_s0 + $0x28] sm:$0xff]  ;;  %v3114_v29 = vpack.c.bf16 %v52_v9, %v51_v7 }
   0x6   :  { %43 = vst [vmem:[#allocation3 + $0x30] sm:$0xff] %v2978_v1  ;;  %44 = vst [vmem:[#allocation3 + $0x48] sm:$0xff] %v2978_v1  ;;  %2539 = vmatprep.mubr.bf16.mxu0 %v3051_v8  ;;  %v53_v11 = vld [vmem:[%s3536_s0 + $0x20] sm:$0xff]  ;;  %v55_v13 = vld [vmem:[%s3536_s0 + $0x30] sm:$0xff] }
   0x7   :  { %45 = vst [vmem:[#allocation3 + $0x60] sm:$0xff] %v2978_v1  ;;  %46 = vst [vmem:[#allocation3 + $0x78] sm:$0xff] %v2978_v1  ;;  %2526 = vmatpush3.bf16.msra.mxu0 %v2898_v2  ;;  %v56_v14 = vld [vmem:[%s3536_s0 + $0x38] sm:$0xff]  ;;  %v57_v15 = vld [vmem:[%s3536_s0 + $0x40] sm:$0xff]  ;;  %v3122_v32 = vpack.c.bf16 %v54_v12, %v53_v11 }
   0x8   :  { %47 = vst [vmem:[#allocation3 + $0x90] sm:$0xff] %v2978_v1  ;;  %48 = vst [vmem:[#allocation3 + $0xa8] sm:$0xff] %v2978_v1  ;;  %2527 = vmatprep.subr.bf16.mxu0 %v2899_v3  ;;  %v58_v16 = vld [vmem:[%s3536_s0 + $0x48] sm:$0xff]  ;;  %v59_v17 = vld [vmem:[%s3536_s0 + $0x50] sm:$0xff]  ;;  %v3132_v35 = vpack.c.bf16 %v56_v14, %v55_v13 }
   0x9   :  { %65 = vst [vmem:[#allocation2 + $0x8] sm:$0xff] %v49_v5  ;;  %66 = vst [vmem:[#allocation2 + $0x10] sm:$0xff] %v50_v6  ;;  %v60_v18 = vld [vmem:[%s3536_s0 + $0x58] sm:$0xff]  ;;  %v2902_v19 = vld [vmem:[%s3535_s1 + $0x68] sm:$0xff]   ;;  %v3137_v37 = vpack.c.bf16 %v58_v16, %v57_v15 }
   0xa   :  { %67 = vst [vmem:[#allocation2 + $0x20] sm:$0xff] %v51_v7  ;;  %68 = vst [vmem:[#allocation2 + $0x28] sm:$0xff] %v52_v9  ;;  %v61_v20 = vld [vmem:[%s3536_s0 + $0x60] sm:$0xff]  ;;  %v62_v21 = vld [vmem:[%s3536_s0 + $0x68] sm:$0xff]  ;;  %v3144_v39 = vpack.c.bf16 %v60_v18, %v59_v17 }
   0xb   :  { %2528 = vmatpush3.bf16.msra.mxu0 %v2899_v3  ;;  %69 = vst [vmem:[#allocation2 + $0x38] sm:$0xff] %v53_v11  ;;  %70 = vst [vmem:[#allocation2 + $0x40] sm:$0xff] %v54_v12  ;;  %v63_v22 = vld [vmem:[%s3536_s0 + $0x70] sm:$0xff]  ;;  %v64_v23 = vld [vmem:[%s3536_s0 + $0x78] sm:$0xff]  ;;  %v3149_v41 = vpack.c.bf16 %v62_v21, %v61_v20 }
   0xc   :  { %2529 = vmatprep.subr.bf16.mxu0 %v2900_v4  ;;  %71 = vst [vmem:[#allocation2 + $0x50] sm:$0xff] %v55_v13  ;;  %72 = vst [vmem:[#allocation2 + $0x58] sm:$0xff] %v56_v14  ;;  %v2903_v24 = vld [vmem:[%s3535_s1 + $0x70] sm:$0xff]   ;;  %v2904_v25 = vld [vmem:[%s3535_s1 + $0x78] sm:$0xff]   ;;  %v3156_v45 = vpack.c.bf16 %v64_v23, %v63_v22 }
   0xd   :  { %73 = vst [vmem:[#allocation2 + $0x68] sm:$0xff] %v57_v15  ;;  %74 = vst [vmem:[#allocation2 + $0x70] sm:$0xff] %v58_v16  ;;  %v2905_v26 = vld [vmem:[%s3535_s1] sm:$0xff]   ;;  %v2914_v28 = vld [vmem:[%s3537_s3 + $0x48] sm:$0xff]  }
   0xe   :  { %75 = vst [vmem:[#allocation2 + $0x80] sm:$0xff] %v59_v17  ;;  %76 = vst [vmem:[#allocation2 + $0x88] sm:$0xff] %v60_v18  ;;  %v2913_v27 = vld [vmem:[%s3537_s3 + $0x40] sm:$0xff]   ;;  %v2906_v30 = vld [vmem:[%s3535_s1 + $0x8] sm:$0xff]  }
   0xf   :  { %2530 = vmatpush3.bf16.msra.mxu0 %v2900_v4  ;;  %77 = vst [vmem:[#allocation2 + $0x98] sm:$0xff] %v61_v20  ;;  %78 = vst [vmem:[#allocation2 + $0xa0] sm:$0xff] %v62_v21  ;;  %2587 = vmatprep.subr.bf16.mxu1 %v2913_v27  ;;  %v2915_v31 = vld [vmem:[%s3537_s3 + $0x50] sm:$0xff]   ;;  %v2916_v33 = vld [vmem:[%s3537_s3 + $0x58] sm:$0xff]  }
  0x10   :  { %2531 = vmatprep.subr.bf16.mxu0 %v2901_v10  ;;  %79 = vst [vmem:[#allocation2 + $0xb0] sm:$0xff] %v63_v22  ;;  %80 = vst [vmem:[#allocation2 + $0xb8] sm:$0xff] %v64_v23  ;;  %2588 = vmatpush3.bf16.msra.mxu1 %v2913_v27  ;;  %v2907_v34 = vld [vmem:[%s3535_s1 + $0x10] sm:$0xff]   ;;  %v2908_v36 = vld [vmem:[%s3535_s1 + $0x18] sm:$0xff]  }
  0x11   :  { %2589 = vmatprep.subr.bf16.mxu1 %v2914_v28  ;;  %v2909_v38 = vld [vmem:[%s3535_s1 + $0x20] sm:$0xff]   ;;  %v2910_v40 = vld [vmem:[%s3535_s1 + $0x28] sm:$0xff]   ;;  %v2911_v42 = vld [vmem:[%s3535_s1 + $0x30] sm:$0xff]  }
  0x12   :  { %v81_v43 = vld [vmem:[#allocation2 + $0x7] sm:$0xff]  ;;  %v82_v44 = vld [vmem:[#allocation2 + $0xf] sm:$0xff]  ;;  %v2912_v46 = vld [vmem:[%s3535_s1 + $0x38] sm:$0xff]  }
  0x13   :  { %2532 = vmatpush3.bf16.msra.mxu0 %v2901_v10  ;;  %v97_v47 = vpack.c.bf16 %v82_v44, %v81_v43  ;;  %v83_v48 = vld [vmem:[#allocation2 + $0x1f] sm:$0xff]  ;;  %v84_v49 = vld [vmem:[#allocation2 + $0x27] sm:$0xff]  ;;  %v85_v50 = vld [vmem:[#allocation2 + $0x37] sm:$0xff] }
  0x14   :  { %2533 = vmatprep.subr.bf16.mxu0 %v2902_v19  ;;  %2590 = vmatpush3.bf16.msra.mxu1 %v2914_v28  ;;  %v86_v51 = vld [vmem:[#allocation2 + $0x3f] sm:$0xff]  ;;  %v98_v52 = vpack.c.bf16 %v84_v49, %v83_v48  ;;  %v87_v54 = vld [vmem:[#allocation2 + $0x4f] sm:$0xff]  ;;  %v88_v55 = vld [vmem:[#allocation2 + $0x57] sm:$0xff] }
  0x15   :  { %2591 = vmatprep.subr.bf16.mxu1 %v2915_v31  ;;  %v99_v53 = vpack.c.bf16 %v86_v51, %v85_v50  ;;  %v89_v56 = vld [vmem:[#allocation2 + $0x67] sm:$0xff]  ;;  %v90_v57 = vld [vmem:[#allocation2 + $0x6f] sm:$0xff]  ;;  %v100_v58 = vpack.c.bf16 %v88_v55, %v87_v54  ;;  %v91_v60 = vld [vmem:[#allocation2 + $0x7f] sm:$0xff] }
  0x16   :  { %v101_v59 = vpack.c.bf16 %v90_v57, %v89_v56  ;;  %v92_v61 = vld [vmem:[#allocation2 + $0x87] sm:$0xff]  ;;  %v93_v62 = vld [vmem:[#allocation2 + $0x97] sm:$0xff]  ;;  %v94_v63 = vld [vmem:[#allocation2 + $0x9f] sm:$0xff] }
  0x17   :  { %2534 = vmatpush3.bf16.msra.mxu0 %v2902_v19  ;;  %v102_v0 = vpack.c.bf16 %v92_v61, %v91_v60  ;;  %v103_v1 = vpack.c.bf16 %v94_v63, %v93_v62  ;;  %v95_v2 = vld [vmem:[#allocation2 + $0xaf] sm:$0xff]  ;;  %v96_v3 = vld [vmem:[#allocation2 + $0xb7] sm:$0xff]  ;;  %v2917_v5 = vld [vmem:[%s3537_s3 + $0x60] sm:$0xff]  }
  0x18   :  { %2535 = vmatprep.subr.bf16.mxu0 %v2903_v24  ;;  %2592 = vmatpush3.bf16.msra.mxu1 %v2915_v31  ;;  %v104_v4 = vpack.c.bf16 %v96_v3, %v95_v2  ;;  %v2918_v6 = vld [vmem:[%s3537_s3 + $0x68] sm:$0xff]   ;;  %v2919_v7 = vld [vmem:[%s3537_s3 + $0x70] sm:$0xff]   ;;  %v2922_v9 = vld [vmem:[%s3538_s5] sm:$0xff]  }
  0x19   :  { %2593 = vmatprep.subr.bf16.mxu1 %v2916_v33  ;;  %v3181_v10 = vld [vmem:[%s3537_s3] sm:$0xff]   ;;  %v2924_v11 = vld [vmem:[%s3538_s5 + $0x8] sm:$0xff]   ;;  %v2926_v12 = vld [vmem:[%s3538_s5 + $0x10] sm:$0xff]  }
  0x1a   :  { %v2928_v13 = vld [vmem:[%s3538_s5 + $0x18] sm:$0xff]   ;;  %v2930_v14 = vld [vmem:[%s3538_s5 + $0x20] sm:$0xff]   ;;  %v2932_v15 = vld [vmem:[%s3538_s5 + $0x28] sm:$0xff]  }
  0x1b   :  { %2536 = vmatpush3.bf16.msra.mxu0 %v2903_v24  ;;  %v2934_v16 = vld [vmem:[%s3538_s5 + $0x30] sm:$0xff]   ;;  %v2936_v17 = vld [vmem:[%s3538_s5 + $0x38] sm:$0xff]   ;;  %v3215_v18 = vld [vmem:[%s3539_s2] ss:$0 sm:$0xff] }
  0x1c   :  { %2537 = vmatprep.subr.bf16.mxu0 %v2904_v25  ;;  %2594 = vmatpush3.bf16.msra.mxu1 %v2916_v33  ;;  %v2929_v61 = vld [vmem:[%s3537_s3 + $0x20] sm:$0xff]  }
  0x1d   :  { %2595 = vmatprep.subr.bf16.mxu1 %v2917_v5 }
  0x1f   :  { %2538 = vmatpush3.bf16.msra.mxu0 %v2904_v25 }
  0x20   :  { %2555 = vmatprep.subr.bf16.mxu0 %v2905_v26  ;;  %2596 = vmatpush3.bf16.msra.mxu1 %v2917_v5 }
  0x21   :  { %2597 = vmatprep.subr.bf16.mxu1 %v2918_v6 }
  0x22   :  { %2540 = vmatmul.mubr.bf16.vlgmr.msra.gmra.mrb[0].mxu0 %v3114_v29 }
  0x23   :  { %2556 = vmatpush3.bf16.msra.mxu0 %v2905_v26  ;;  %2543 = vmatprep.mubr.bf16.mxu0 %v3122_v32 }
  0x24   :  { %2557 = vmatprep.subr.bf16.mxu0 %v2906_v30  ;;  %2598 = vmatpush3.bf16.msra.mxu1 %v2918_v6 }
  0x25   :  { %2599 = vmatprep.subr.bf16.mxu1 %v2919_v7 }
  0x27   :  { %2558 = vmatpush3.bf16.msra.mxu0 %v2906_v30 }
  0x28   :  { %2559 = vmatprep.subr.bf16.mxu0 %v2907_v34  ;;  %2600 = vmatpush3.bf16.msra.mxu1 %v2919_v7 }
  0x2a   :  { %2544 = vmatmul.mubr.bf16.gmra.mrb[4].mxu0 %v3132_v35 }
  0x2b   :  { %2560 = vmatpush3.bf16.msra.mxu0 %v2907_v34  ;;  %2547 = vmatprep.mubr.bf16.mxu0 %v3137_v37 }
  0x2c   :  { %2561 = vmatprep.subr.bf16.mxu0 %v2908_v36 }
  0x2f   :  { %2562 = vmatpush3.bf16.msra.mxu0 %v2908_v36  ;;  %v2923_v36 = vld [vmem:[%s3537_s3 + $0x8] sm:$0xff]  }
  0x30   :  { %2563 = vmatprep.subr.bf16.mxu0 %v2909_v38 }
  0x32   :  { %2548 = vmatmul.mubr.bf16.gmra.mrb[8].mxu0 %v3144_v39 }
  0x33   :  { %2564 = vmatpush3.bf16.msra.mxu0 %v2909_v38  ;;  %2551 = vmatprep.mubr.bf16.mxu0 %v3149_v41 }
  0x34   :  { %2565 = vmatprep.subr.bf16.mxu0 %v2910_v40 }
  0x37   :  { %2566 = vmatpush3.bf16.msra.mxu0 %v2910_v40 }
  0x38   :  { %2567 = vmatprep.subr.bf16.mxu0 %v2911_v42 }
  0x3a   :  { %2552 = vmatmul.mubr.bf16.gmra.mrb[12].mxu0 %v3156_v45 }
  0x3b   :  { %2568 = vmatpush3.bf16.msra.mxu0 %v2911_v42  ;;  %2571 = vmatprep.mubr.bf16.mxu0 %v97_v47 }
  0x3c   :  { %2569 = vmatprep.subr.bf16.mxu0 %v2912_v46 }
  0x3f   :  { %2570 = vmatpush3.bf16.msra.mxu0 %v2912_v46 }
  0x40   :  { %2651 = vmatprep.subr.bf16.mxu0 %v2922_v9 }
  0x42   :  { %2572 = vmatmul.mubr.bf16.vlgmr.msra.gmra.mrb[0].mxu0 %v98_v52  ;;  %v2927_v52 = vld [vmem:[%s3537_s3 + $0x18] sm:$0xff]  }
  0x43   :  { %2575 = vmatprep.mubr.bf16.mxu0 %v99_v53  ;;  %2652 = vmatpush3.bf16.msra.mxu0 %v2922_v9 }
  0x44   :  { %2653 = vmatprep.subr.bf16.mxu0 %v2924_v11 }
  0x47   :  { %2654 = vmatpush3.bf16.msra.mxu0 %v2924_v11 }
  0x48   :  { %2655 = vmatprep.subr.bf16.mxu0 %v2926_v12 }
  0x4a   :  { %2576 = vmatmul.mubr.bf16.gmra.mrb[4].mxu0 %v100_v58 }
  0x4b   :  { %2579 = vmatprep.mubr.bf16.mxu0 %v101_v59  ;;  %2656 = vmatpush3.bf16.msra.mxu0 %v2926_v12 }
  0x4c   :  { %2657 = vmatprep.subr.bf16.mxu0 %v2928_v13 }
  0x4f   :  { %2658 = vmatpush3.bf16.msra.mxu0 %v2928_v13  ;;  %v2933_v13 = vld [vmem:[%s3537_s3 + $0x30] sm:$0xff]  }
  0x50   :  { %2659 = vmatprep.subr.bf16.mxu0 %v2930_v14 }
  0x52   :  { %2580 = vmatmul.mubr.bf16.gmra.mrb[8].mxu0 %v102_v0 }
  0x53   :  { %2583 = vmatprep.mubr.bf16.mxu0 %v103_v1  ;;  %2660 = vmatpush3.bf16.msra.mxu0 %v2930_v14 }
  0x54   :  { %2661 = vmatprep.subr.bf16.mxu0 %v2932_v15 }
  0x57   :  { %2662 = vmatpush3.bf16.msra.mxu0 %v2932_v15 }
  0x58   :  { %2663 = vmatprep.subr.bf16.mxu0 %v2934_v16 }
  0x5a   :  { %2584 = vmatmul.mubr.bf16.gmra.mrb[12].mxu0 %v104_v4  ;;  %v2931_v4 = vld [vmem:[%s3537_s3 + $0x28] sm:$0xff]  }
  0x5b   :  { %2667 = vmatprep.mubr.bf16.mxu0 %v3051_v8  ;;  %v2920_v8 = vld [vmem:[%s3537_s3 + $0x78] sm:$0xff]   ;;  %2664 = vmatpush3.bf16.msra.mxu0 %v2934_v16 }
  0x5c   :  { %2601 = vmatprep.subr.bf16.mxu1 %v2920_v8  ;;  %2665 = vmatprep.subr.bf16.mxu0 %v2936_v17 }
  0x5d   :  { %2602 = vmatpush3.bf16.msra.mxu1 %v2920_v8 }
  0x5e   :  { %2619 = vmatprep.subr.bf16.mxu1 %v3181_v10 }
  0x5f   :  { %2666 = vmatpush3.bf16.msra.mxu0 %v2936_v17 }
  0x62   :  { %2668 = vmatmul.mubr.bf16.vlgmr.msra.gmra.mrb[16].mxu0 %v3114_v29 }
  0x63   :  { %2671 = vmatprep.mubr.bf16.mxu0 %v3122_v32 }
  0x6a   :  { %2672 = vmatmul.mubr.bf16.gmra.mrb[20].mxu0 %v3132_v35 }
  0x6b   :  { %2675 = vmatprep.mubr.bf16.mxu0 %v3137_v37 }
  0x72   :  { %2676 = vmatmul.mubr.bf16.gmra.mrb[24].mxu0 %v3144_v39 }
  0x73   :  { %2679 = vmatprep.mubr.bf16.mxu0 %v3149_v41 }
  0x7a   :  { %2680 = vmatmul.mubr.bf16.gmra.mrb[28].mxu0 %v3156_v45  ;;  %v2925_v45 = vld [vmem:[%s3537_s3 + $0x10] sm:$0xff]  }
 0x115   :  { %v2573_v19 = vpop.f32.mrb[0].mxu0 }
 0x116   :  { %v461_v20 = vadd.f32 %v2573_v19, %v3215_v18  ;;  %v389_v21 = vpop.f32.mrb[1].mxu0 }
 0x117   :  { %v459_v22 = vadd.f32 %v3215_v18, %v389_v21  ;;  %v2574_v23 = vpop.f32.mrb[2].mxu0  ;;  %v2937_v21 = vld [vmem:[%s3535_s1 + $0xc0] sm:$0xff]  }
 0x118   :  { %v477_v24 = vmax.f32 %v461_v20, 0.0  ;;  %v462_v25 = vadd.f32 %v2574_v23, %v3215_v18  ;;  %v392_v26 = vpop.f32.mrb[3].mxu0 }
 0x119   :  { %v475_v27 = vmax.f32 %v459_v22, 0.0  ;;  %v460_v28 = vadd.f32 %v3215_v18, %v392_v26 }
 0x11a   :  { %493 = vst [vmem:[#allocation3 + $0x20] sm:$0xff] %v477_v24  ;;  %v478_v29 = vmax.f32 %v462_v25, 0.0 }
 0x11b   :  { %491 = vst [vmem:[#allocation3 + $0x8] sm:$0xff] %v475_v27  ;;  %v476_v30 = vmax.f32 %v460_v28, 0.0 }
 0x11c   :  { %494 = vst [vmem:[#allocation3 + $0x28] sm:$0xff] %v478_v29  ;;  %v564_v31 = vpack.c.bf16 %v478_v29, %v477_v24  ;;  %v2939_v29 = vld [vmem:[%s3535_s1 + $0xd0] sm:$0xff]  }
 0x11d   :  { %492 = vst [vmem:[#allocation3 + $0x10] sm:$0xff] %v476_v30  ;;  %v2577_v32 = vpop.f32.mrb[4].mxu0  ;;  %v563_v33 = vpack.c.bf16 %v476_v30, %v475_v27  ;;  %v2938_v27 = vld [vmem:[%s3535_s1 + $0xc8] sm:$0xff]  }
 0x11e   :  { %v465_v34 = vadd.f32 %v2577_v32, %v3215_v18  ;;  %v405_v35 = vpop.f32.mrb[5].mxu0 }
 0x11f   :  { %v463_v37 = vadd.f32 %v3215_v18, %v405_v35  ;;  %v2578_v38 = vpop.f32.mrb[6].mxu0  ;;  %2603 = vmatprep.mubr.bf16.mxu1 %v563_v33 }
 0x120   :  { %v481_v39 = vmax.f32 %v465_v34, 0.0  ;;  %v466_v40 = vadd.f32 %v2578_v38, %v3215_v18  ;;  %v408_v41 = vpop.f32.mrb[7].mxu0  ;;  %2604 = vmatmul.mubr.bf16.vlgmr.msra.gmra.mrb[0].mxu1 %v564_v31 }
 0x121   :  { %v479_v42 = vmax.f32 %v463_v37, 0.0  ;;  %v464_v43 = vadd.f32 %v3215_v18, %v408_v41  ;;  %2620 = vmatpush3.bf16.msra.mxu1 %v3181_v10  ;;  %v509_v24 = vld [vmem:[#allocation3 + $0x1f] sm:$0xff] }
 0x122   :  { %497 = vst [vmem:[#allocation3 + $0x50] sm:$0xff] %v481_v39  ;;  %v482_v44 = vmax.f32 %v466_v40, 0.0  ;;  %2621 = vmatprep.subr.bf16.mxu1 %v2923_v36  ;;  %v507_v19 = vld [vmem:[#allocation3 + $0x7] sm:$0xff] }
 0x123   :  { %495 = vst [vmem:[#allocation3 + $0x38] sm:$0xff] %v479_v42  ;;  %v480_v46 = vmax.f32 %v464_v43, 0.0  ;;  %v510_v22 = vld [vmem:[#allocation3 + $0x27] sm:$0xff] }
 0x124   :  { %498 = vst [vmem:[#allocation3 + $0x58] sm:$0xff] %v482_v44  ;;  %v566_v47 = vpack.c.bf16 %v482_v44, %v481_v39  ;;  %v508_v16 = vld [vmem:[#allocation3 + $0xf] sm:$0xff]  ;;  %v524_v25 = vpack.c.bf16 %v510_v22, %v509_v24 }
 0x125   :  { %496 = vst [vmem:[#allocation3 + $0x40] sm:$0xff] %v480_v46  ;;  %v2581_v48 = vpop.f32.mrb[8].mxu0  ;;  %2622 = vmatpush3.bf16.msra.mxu1 %v2923_v36  ;;  %v565_v49 = vpack.c.bf16 %v480_v46, %v479_v42  ;;  %v523_v20 = vpack.c.bf16 %v508_v16, %v507_v19  ;;  %v2941_v46 = vld [vmem:[%s3535_s1 + $0xe0] sm:$0xff]  }
 0x126   :  { %v469_v50 = vadd.f32 %v2581_v48, %v3215_v18  ;;  %v421_v51 = vpop.f32.mrb[9].mxu0  ;;  %2623 = vmatprep.subr.bf16.mxu1 %v2925_v45 }
 0x127   :  { %v467_v53 = vadd.f32 %v3215_v18, %v421_v51  ;;  %v2582_v54 = vpop.f32.mrb[10].mxu0  ;;  %2607 = vmatprep.mubr.bf16.mxu1 %v565_v49 }
 0x128   :  { %v485_v55 = vmax.f32 %v469_v50, 0.0  ;;  %v470_v56 = vadd.f32 %v2582_v54, %v3215_v18  ;;  %v424_v57 = vpop.f32.mrb[11].mxu0  ;;  %2608 = vmatmul.mubr.bf16.gmra.mrb[4].mxu1 %v566_v47  ;;  %v2942_v50 = vld [vmem:[%s3535_s1 + $0xe8] sm:$0xff]  }
 0x129   :  { %v483_v58 = vmax.f32 %v467_v53, 0.0  ;;  %v468_v59 = vadd.f32 %v3215_v18, %v424_v57  ;;  %2624 = vmatpush3.bf16.msra.mxu1 %v2925_v45  ;;  %v513_v32 = vld [vmem:[#allocation3 + $0x4f] sm:$0xff]  ;;  %v2940_v45 = vld [vmem:[%s3535_s1 + $0xd8] sm:$0xff]  }
 0x12a   :  { %501 = vst [vmem:[#allocation3 + $0x80] sm:$0xff] %v485_v55  ;;  %v486_v60 = vmax.f32 %v470_v56, 0.0  ;;  %2625 = vmatprep.subr.bf16.mxu1 %v2927_v52  ;;  %v511_v26 = vld [vmem:[#allocation3 + $0x37] sm:$0xff] }
 0x12b   :  { %499 = vst [vmem:[#allocation3 + $0x68] sm:$0xff] %v483_v58  ;;  %v484_v62 = vmax.f32 %v468_v59, 0.0  ;;  %v514_v30 = vld [vmem:[#allocation3 + $0x57] sm:$0xff] }
 0x12c   :  { %502 = vst [vmem:[#allocation3 + $0x88] sm:$0xff] %v486_v60  ;;  %v568_v63 = vpack.c.bf16 %v486_v60, %v485_v55  ;;  %v512_v23 = vld [vmem:[#allocation3 + $0x3f] sm:$0xff]  ;;  %v526_v33 = vpack.c.bf16 %v514_v30, %v513_v32 }
 0x12d   :  { %500 = vst [vmem:[#allocation3 + $0x70] sm:$0xff] %v484_v62  ;;  %v2585_v0 = vpop.f32.mrb[12].mxu0  ;;  %2626 = vmatpush3.bf16.msra.mxu1 %v2927_v52  ;;  %v567_v1 = vpack.c.bf16 %v484_v62, %v483_v58  ;;  %v525_v28 = vpack.c.bf16 %v512_v23, %v511_v26  ;;  %v2943_v52 = vld [vmem:[%s3535_s1 + $0xf0] sm:$0xff]   ;;  %v2944_v56 = vld [vmem:[%s3535_s1 + $0xf8] sm:$0xff]   ;;  %v3288_v58 = vld [vmem:[%s3535_s1 + $0x80] sm:$0xff]  }
 0x12e   :  { %v473_v2 = vadd.f32 %v2585_v0, %v3215_v18  ;;  %v437_v3 = vpop.f32.mrb[13].mxu0  ;;  %2627 = vmatprep.subr.bf16.mxu1 %v2929_v61 }
 0x12f   :  { %v471_v5 = vadd.f32 %v3215_v18, %v437_v3  ;;  %v2586_v6 = vpop.f32.mrb[14].mxu0  ;;  %2611 = vmatprep.mubr.bf16.mxu1 %v567_v1  ;;  %v2953_v3 = vld [vmem:[%s3537_s3 + $0xc0] sm:$0xff]  }
 0x130   :  { %v489_v7 = vmax.f32 %v473_v2, 0.0  ;;  %v474_v8 = vadd.f32 %v2586_v6, %v3215_v18  ;;  %v440_v9 = vpop.f32.mrb[15].mxu0  ;;  %2612 = vmatmul.mubr.bf16.gmra.mrb[8].mxu1 %v568_v63  ;;  %2747 = vmatprep.subr.bf16.mxu0 %v2953_v3  ;;  %v2956_v6 = vld [vmem:[%s3537_s3 + $0xd8] sm:$0xff]  }
 0x131   :  { %v487_v10 = vmax.f32 %v471_v5, 0.0  ;;  %v472_v11 = vadd.f32 %v3215_v18, %v440_v9  ;;  %2628 = vmatpush3.bf16.msra.mxu1 %v2929_v61  ;;  %v2935_v18 = vld [vmem:[%s3537_s3 + $0x38] sm:$0xff]   ;;  %2748 = vmatpush3.bf16.msra.mxu0 %v2953_v3  ;;  %v2955_v5 = vld [vmem:[%s3537_s3 + $0xd0] sm:$0xff]  }
 0x132   :  { %505 = vst [vmem:[#allocation3 + $0xb0] sm:$0xff] %v489_v7  ;;  %v490_v12 = vmax.f32 %v474_v8, 0.0  ;;  %2629 = vmatprep.subr.bf16.mxu1 %v2931_v4  ;;  %v515_v34 = vld [vmem:[#allocation3 + $0x67] sm:$0xff]  ;;  %v517_v38 = vld [vmem:[#allocation3 + $0x7f] sm:$0xff] }
 0x133   :  { %503 = vst [vmem:[#allocation3 + $0x98] sm:$0xff] %v487_v10  ;;  %v488_v14 = vmax.f32 %v472_v11, 0.0  ;;  %v518_v36 = vld [vmem:[#allocation3 + $0x87] sm:$0xff]  ;;  %v3327_v8 = vld [vmem:[%s3541_s6] ss:$0 sm:$0xff] }
 0x134   :  { %506 = vst [vmem:[#allocation3 + $0xb8] sm:$0xff] %v490_v12  ;;  %v570_v15 = vpack.c.bf16 %v490_v12, %v489_v7  ;;  %v516_v31 = vld [vmem:[#allocation3 + $0x6f] sm:$0xff]  ;;  %v528_v39 = vpack.c.bf16 %v518_v36, %v517_v38  ;;  %v3322_v7 = vld [vmem:[%s3540_s4] ss:$0 sm:$0xff] }
 0x135   :  { %504 = vst [vmem:[#allocation3 + $0xa0] sm:$0xff] %v488_v14  ;;  %2630 = vmatpush3.bf16.msra.mxu1 %v2931_v4  ;;  %v569_v17 = vpack.c.bf16 %v488_v14, %v487_v10  ;;  %v527_v35 = vpack.c.bf16 %v516_v31, %v515_v34  ;;  %v2669_v47 = vpop.f32.mrb[16].mxu0  ;;  %v2954_v4 = vld [vmem:[%s3537_s3 + $0xc8] sm:$0xff]  }
 0x136   :  { %2631 = vmatprep.subr.bf16.mxu1 %v2933_v13  ;;  %v1046_v48 = vpop.f32.mrb[17].mxu0  ;;  %2749 = vmatprep.subr.bf16.mxu0 %v2954_v4  ;;  %v1055_v11 = vadd.f32 %v2669_v47, %v3327_v8 }
 0x137   :  { %2615 = vmatprep.mubr.bf16.mxu1 %v569_v17  ;;  %v2670_v49 = vpop.f32.mrb[18].mxu0  ;;  %2750 = vmatpush3.bf16.msra.mxu0 %v2954_v4  ;;  %v1047_v14 = vadd.f32 %v3327_v8, %v1046_v48 }
 0x138   :  { %2616 = vmatmul.mubr.bf16.gmra.mrb[12].mxu1 %v570_v15  ;;  %v1049_v51 = vpop.f32.mrb[19].mxu0  ;;  %2751 = vmatprep.subr.bf16.mxu0 %v2955_v5  ;;  %v1058_v23 = vadd.f32 %v2670_v49, %v3327_v8 }
 0x139   :  { %2632 = vmatpush3.bf16.msra.mxu1 %v2933_v13  ;;  %2635 = vmatprep.mubr.bf16.mxu1 %v523_v20  ;;  %v521_v43 = vld [vmem:[#allocation3 + $0xaf] sm:$0xff]  ;;  %v1050_v26 = vadd.f32 %v3327_v8, %v1049_v51 }
 0x13a   :  { %2633 = vmatprep.subr.bf16.mxu1 %v2935_v18  ;;  %v519_v40 = vld [vmem:[#allocation3 + $0x97] sm:$0xff] }
 0x13b   :  { %v522_v42 = vld [vmem:[#allocation3 + $0xb7] sm:$0xff]  ;;  %2752 = vmatpush3.bf16.msra.mxu0 %v2955_v5 }
 0x13c   :  { %v520_v37 = vld [vmem:[#allocation3 + $0x9f] sm:$0xff]  ;;  %v530_v44 = vpack.c.bf16 %v522_v42, %v521_v43  ;;  %2753 = vmatprep.subr.bf16.mxu0 %v2956_v6 }
 0x13d   :  { %2634 = vmatpush3.bf16.msra.mxu1 %v2935_v18  ;;  %v529_v41 = vpack.c.bf16 %v520_v37, %v519_v40  ;;  %v2673_v53 = vpop.f32.mrb[20].mxu0 }
 0x13e   :  { %2683 = vmatprep.subr.bf16.mxu1 %v2937_v21  ;;  %v3276_v54 = vpop.f32.mrb[21].mxu0  ;;  %v1071_v34 = vadd.f32 %v2673_v53, %v3327_v8 }
 0x13f   :  { %v3278_v55 = vpop.f32.mrb[22].mxu0  ;;  %2754 = vmatpush3.bf16.msra.mxu0 %v2956_v6  ;;  %v1063_v38 = vadd.f32 %v3327_v8, %v3276_v54 }
 0x140   :  { %2636 = vmatmul.mubr.bf16.vlgmr.msra.gmra.mrb[0].mxu1 %v524_v25  ;;  %v3283_v57 = vpop.f32.mrb[23].mxu0  ;;  %v1074_v48 = vadd.f32 %v3278_v55, %v3327_v8 }
 0x141   :  { %2639 = vmatprep.mubr.bf16.mxu1 %v525_v28  ;;  %2684 = vmatpush3.bf16.msra.mxu1 %v2937_v21  ;;  %v1066_v53 = vadd.f32 %v3327_v8, %v3283_v57  ;;  %v2947_v57 = vld [vmem:[%s3535_s1 + $0x90] sm:$0xff]  }
 0x142   :  { %2685 = vmatprep.subr.bf16.mxu1 %v2938_v27 }
 0x145   :  { %2686 = vmatpush3.bf16.msra.mxu1 %v2938_v27  ;;  %v3290_v59 = vpop.f32.mrb[24].mxu0 }
 0x146   :  { %2687 = vmatprep.subr.bf16.mxu1 %v2939_v29  ;;  %v3293_v60 = vpop.f32.mrb[25].mxu0 }
 0x147   :  { %v3295_v61 = vpop.f32.mrb[26].mxu0 }
 0x148   :  { %2640 = vmatmul.mubr.bf16.gmra.mrb[4].mxu1 %v526_v33  ;;  %v3297_v62 = vpop.f32.mrb[27].mxu0 }
 0x149   :  { %2643 = vmatprep.mubr.bf16.mxu1 %v527_v35  ;;  %2688 = vmatpush3.bf16.msra.mxu1 %v2939_v29 }
 0x14a   :  { %2689 = vmatprep.subr.bf16.mxu1 %v2940_v45 }
 0x14d   :  { %2690 = vmatpush3.bf16.msra.mxu1 %v2940_v45  ;;  %v3299_v63 = vpop.f32.mrb[28].mxu0 }
 0x14e   :  { %2691 = vmatprep.subr.bf16.mxu1 %v2941_v46  ;;  %v3301_v0 = vpop.f32.mrb[29].mxu0 }
 0x14f   :  { %v3303_v1 = vpop.f32.mrb[30].mxu0 }
 0x150   :  { %2644 = vmatmul.mubr.bf16.gmra.mrb[8].mxu1 %v528_v39  ;;  %v3305_v2 = vpop.f32.mrb[31].mxu0 }
 0x151   :  { %2647 = vmatprep.mubr.bf16.mxu1 %v529_v41  ;;  %2692 = vmatpush3.bf16.msra.mxu1 %v2941_v46 }
 0x152   :  { %2693 = vmatprep.subr.bf16.mxu1 %v2942_v50 }
 0x155   :  { %2694 = vmatpush3.bf16.msra.mxu1 %v2942_v50  ;;  %v2946_v50 = vld [vmem:[%s3535_s1 + $0x88] sm:$0xff]  }
 0x156   :  { %2695 = vmatprep.subr.bf16.mxu1 %v2943_v52 }
 0x158   :  { %2648 = vmatmul.mubr.bf16.gmra.mrb[12].mxu1 %v530_v44 }
 0x159   :  { %2696 = vmatpush3.bf16.msra.mxu1 %v2943_v52 }
 0x15a   :  { %2697 = vmatprep.subr.bf16.mxu1 %v2944_v56 }
 0x15d   :  { %2698 = vmatpush3.bf16.msra.mxu1 %v2944_v56 }
 0x15e   :  { %2715 = vmatprep.subr.bf16.mxu1 %v3288_v58 }
 0x213   :  { %v2637_v9 = vpop.f32.mrb[0].mxu1 }
 0x214   :  { %v887_v10 = vadd.f32 %v2637_v9, %v3322_v7  ;;  %v815_v12 = vpop.f32.mrb[1].mxu1  ;;  %v1087_v9 = vadd.f32 %v3290_v59, %v3327_v8 }
 0x215   :  { %v885_v13 = vadd.f32 %v3322_v7, %v815_v12  ;;  %v2638_v15 = vpop.f32.mrb[2].mxu1 }
 0x216   :  { %v903_v16 = vmax.f32 %v887_v10, 0.0  ;;  %v888_v17 = vadd.f32 %v2638_v15, %v3322_v7  ;;  %v818_v19 = vpop.f32.mrb[3].mxu1 }
 0x217   :  { %v901_v18 = vmax.f32 %v885_v13, 0.0  ;;  %v886_v20 = vadd.f32 %v3322_v7, %v818_v19 }
 0x218   :  { %v1111_v21 = vadd.f32 %v1055_v11, %v903_v16  ;;  %v904_v22 = vmax.f32 %v888_v17, 0.0 }
 0x219   :  { %v1109_v24 = vadd.f32 %v1047_v14, %v901_v18  ;;  %v902_v25 = vmax.f32 %v886_v20, 0.0 }
 0x21a   :  { %v1127_v27 = vmax.f32 %v1111_v21, 0.0  ;;  %v1112_v28 = vadd.f32 %v1058_v23, %v904_v22  ;;  %v2948_v22 = vld [vmem:[%s3535_s1 + $0x98] sm:$0xff]  }
 0x21b   :  { %v1125_v29 = vmax.f32 %v1109_v24, 0.0  ;;  %v1110_v30 = vadd.f32 %v1050_v26, %v902_v25  ;;  %v2641_v31 = vpop.f32.mrb[4].mxu1  ;;  %v1082_v25 = vadd.f32 %v3327_v8, %v3297_v62  ;;  %v2949_v62 = vld [vmem:[%s3535_s1 + $0xa0] sm:$0xff]  }
 0x21c   :  { %1143 = vst [vmem:[#allocation2 + $0x20] sm:$0xff] %v1127_v27  ;;  %v3337_v32 = vmax.f32 %v1112_v28, 0.0  ;;  %v891_v33 = vadd.f32 %v2641_v31, %v3322_v7  ;;  %v831_v35 = vpop.f32.mrb[5].mxu1 }
 0x21d   :  { %1141 = vst [vmem:[#allocation2 + $0x8] sm:$0xff] %v1125_v29  ;;  %v3341_v36 = vmax.f32 %v1110_v30, 0.0  ;;  %v889_v37 = vadd.f32 %v3322_v7, %v831_v35  ;;  %v2642_v39 = vpop.f32.mrb[6].mxu1 }
 0x21e   :  { %1144 = vst [vmem:[#allocation2 + $0x28] sm:$0xff] %v3337_v32  ;;  %v907_v40 = vmax.f32 %v891_v33, 0.0  ;;  %v892_v41 = vadd.f32 %v2642_v39, %v3322_v7  ;;  %v834_v42 = vpop.f32.mrb[7].mxu1  ;;  %v1215_v49 = vpack.c.bf16 %v3337_v32, %v1127_v27  ;;  %v1103_v33 = vadd.f32 %v3299_v63, %v3327_v8 }
 0x21f   :  { %1142 = vst [vmem:[#allocation2 + $0x10] sm:$0xff] %v3341_v36  ;;  %v905_v43 = vmax.f32 %v889_v37, 0.0  ;;  %v890_v44 = vadd.f32 %v3322_v7, %v834_v42  ;;  %v1214_v45 = vpack.c.bf16 %v3341_v36, %v1125_v29 }
 0x220   :  { %v1115_v46 = vadd.f32 %v1071_v34, %v907_v40  ;;  %v908_v47 = vmax.f32 %v892_v41, 0.0 }
 0x221   :  { %v1113_v51 = vadd.f32 %v1063_v38, %v905_v43  ;;  %v906_v52 = vmax.f32 %v890_v44, 0.0  ;;  %2699 = vmatprep.mubr.bf16.mxu1 %v1214_v45  ;;  %v1095_v38 = vadd.f32 %v3327_v8, %v3301_v0  ;;  %v1106_v0 = vadd.f32 %v3303_v1, %v3327_v8 }
 0x222   :  { %v1131_v54 = vmax.f32 %v1115_v46, 0.0  ;;  %v1116_v56 = vadd.f32 %v1074_v48, %v908_v47  ;;  %2700 = vmatmul.mubr.bf16.vlgmr.msra.gmra.mrb[16].mxu1 %v1215_v49  ;;  %v2950_v48 = vld [vmem:[%s3535_s1 + $0xa8] sm:$0xff]  }
 0x223   :  { %v1129_v3 = vmax.f32 %v1113_v51, 0.0  ;;  %v1114_v4 = vadd.f32 %v1066_v53, %v906_v52  ;;  %v2645_v5 = vpop.f32.mrb[8].mxu1  ;;  %2716 = vmatpush3.bf16.msra.mxu1 %v3288_v58  ;;  %v1079_v58 = vadd.f32 %v3327_v8, %v3293_v60  ;;  %v1090_v60 = vadd.f32 %v3295_v61, %v3327_v8 }
 0x224   :  { %1147 = vst [vmem:[#allocation2 + $0x50] sm:$0xff] %v1131_v54  ;;  %v3360_v55 = vmax.f32 %v1116_v56, 0.0  ;;  %v895_v6 = vadd.f32 %v2645_v5, %v3322_v7  ;;  %v847_v10 = vpop.f32.mrb[9].mxu1  ;;  %2717 = vmatprep.subr.bf16.mxu1 %v2946_v50  ;;  %v2951_v56 = vld [vmem:[%s3535_s1 + $0xb0] sm:$0xff]   ;;  %v1157_v5 = vld [vmem:[#allocation2 + $0x6] sm:$0xff] }
 0x225   :  { %1145 = vst [vmem:[#allocation2 + $0x38] sm:$0xff] %v1129_v3  ;;  %v3368_v11 = vmax.f32 %v1114_v4, 0.0  ;;  %v893_v12 = vadd.f32 %v3322_v7, %v847_v10  ;;  %v2646_v13 = vpop.f32.mrb[10].mxu1  ;;  %v1160_v10 = vld [vmem:[#allocation2 + $0x26] sm:$0xff] }
 0x226   :  { %1148 = vst [vmem:[#allocation2 + $0x58] sm:$0xff] %v3360_v55  ;;  %v911_v14 = vmax.f32 %v895_v6, 0.0  ;;  %v896_v59 = vadd.f32 %v2646_v13, %v3322_v7  ;;  %v850_v15 = vpop.f32.mrb[11].mxu1  ;;  %v1217_v21 = vpack.c.bf16 %v3360_v55, %v1131_v54  ;;  %v2952_v6 = vld [vmem:[%s3535_s1 + $0xb8] sm:$0xff]  }
 0x227   :  { %1146 = vst [vmem:[#allocation2 + $0x40] sm:$0xff] %v3368_v11  ;;  %v909_v16 = vmax.f32 %v893_v12, 0.0  ;;  %v894_v17 = vadd.f32 %v3322_v7, %v850_v15  ;;  %2718 = vmatpush3.bf16.msra.mxu1 %v2946_v50  ;;  %v1216_v19 = vpack.c.bf16 %v3368_v11, %v1129_v3  ;;  %v1159_v12 = vld [vmem:[#allocation2 + $0x1e] sm:$0xff] }
 0x228   :  { %v1119_v18 = vadd.f32 %v1087_v9, %v911_v14  ;;  %v912_v20 = vmax.f32 %v896_v59, 0.0  ;;  %2719 = vmatprep.subr.bf16.mxu1 %v2947_v57  ;;  %v3426_v14 = vld [vmem:[#allocation2] sm:$0xff] }
 0x229   :  { %v1117_v23 = vadd.f32 %v1079_v58, %v909_v16  ;;  %v910_v24 = vmax.f32 %v894_v17, 0.0  ;;  %2703 = vmatprep.mubr.bf16.mxu1 %v1216_v19  ;;  %v1174_v58 = vpack.c.bf16 %v1160_v10, %v1159_v12 }
 0x22a   :  { %v1135_v26 = vmax.f32 %v1119_v18, 0.0  ;;  %v1120_v27 = vadd.f32 %v1090_v60, %v912_v20  ;;  %2704 = vmatmul.mubr.bf16.gmra.mrb[20].mxu1 %v1217_v21 }
 0x22b   :  { %v1133_v28 = vmax.f32 %v1117_v23, 0.0  ;;  %v1118_v29 = vadd.f32 %v1082_v25, %v910_v24  ;;  %v2649_v30 = vpop.f32.mrb[12].mxu1  ;;  %2720 = vmatpush3.bf16.msra.mxu1 %v2947_v57  ;;  %v1163_v17 = vld [vmem:[#allocation2 + $0x4e] sm:$0xff] }
 0x22c   :  { %1151 = vst [vmem:[#allocation2 + $0x80] sm:$0xff] %v1135_v26  ;;  %v3386_v61 = vmax.f32 %v1120_v27, 0.0  ;;  %v899_v31 = vadd.f32 %v2649_v30, %v3322_v7  ;;  %v863_v34 = vpop.f32.mrb[13].mxu1  ;;  %2721 = vmatprep.subr.bf16.mxu1 %v2948_v22  ;;  %v1161_v13 = vld [vmem:[#allocation2 + $0x36] sm:$0xff]  ;;  %v2958_v30 = vld [vmem:[%s3537_s3 + $0xe8] sm:$0xff]  }
 0x22d   :  { %1149 = vst [vmem:[#allocation2 + $0x68] sm:$0xff] %v1133_v28  ;;  %v3394_v35 = vmax.f32 %v1118_v29, 0.0  ;;  %v897_v37 = vadd.f32 %v3322_v7, %v863_v34  ;;  %v2650_v39 = vpop.f32.mrb[14].mxu1  ;;  %v1164_v15 = vld [vmem:[#allocation2 + $0x56] sm:$0xff]  ;;  %v2957_v29 = vld [vmem:[%s3537_s3 + $0xe0] sm:$0xff]  }
 0x22e   :  { %1152 = vst [vmem:[#allocation2 + $0x88] sm:$0xff] %v3386_v61  ;;  %v915_v40 = vmax.f32 %v899_v31, 0.0  ;;  %v900_v63 = vadd.f32 %v2650_v39, %v3322_v7  ;;  %v866_v41 = vpop.f32.mrb[15].mxu1  ;;  %v1219_v47 = vpack.c.bf16 %v3386_v61, %v1135_v26  ;;  %v1162_v57 = vld [vmem:[#allocation2 + $0x3e] sm:$0xff]  ;;  %v1176_v19 = vpack.c.bf16 %v1164_v15, %v1163_v17  ;;  %2755 = vmatprep.subr.bf16.mxu0 %v2957_v29  ;;  %v2959_v31 = vld [vmem:[%s3537_s3 + $0xf0] sm:$0xff]  }
 0x22f   :  { %1150 = vst [vmem:[#allocation2 + $0x70] sm:$0xff] %v3394_v35  ;;  %v913_v42 = vmax.f32 %v897_v37, 0.0  ;;  %v898_v43 = vadd.f32 %v3322_v7, %v866_v41  ;;  %2722 = vmatpush3.bf16.msra.mxu1 %v2948_v22  ;;  %v1218_v44 = vpack.c.bf16 %v3394_v35, %v1133_v28  ;;  %v1098_v7 = vadd.f32 %v3327_v8, %v3305_v2  ;;  %v1158_v2 = vld [vmem:[#allocation2 + $0xe] sm:$0xff]  ;;  %v2961_v34 = vld [vmem:[%s3537_s3 + $0x80] sm:$0xff]  }
 0x230   :  { %v1123_v45 = vadd.f32 %v1103_v33, %v915_v40  ;;  %v916_v46 = vmax.f32 %v900_v63, 0.0  ;;  %2723 = vmatprep.subr.bf16.mxu1 %v2949_v62  ;;  %v1173_v9 = vpack.c.bf16 %v1158_v2, %v1157_v5  ;;  %v1175_v59 = vpack.c.bf16 %v1162_v57, %v1161_v13  ;;  %2756 = vmatpush3.bf16.msra.mxu0 %v2957_v29  ;;  %v2960_v33 = vld [vmem:[%s3537_s3 + $0xf8] sm:$0xff]   ;;  %v2966_v29 = vld [vmem:[%s3537_s3 + $0xa8] sm:$0xff]  }
 0x231   :  { %v1121_v49 = vadd.f32 %v1095_v38, %v913_v42  ;;  %v914_v50 = vmax.f32 %v898_v43, 0.0  ;;  %2707 = vmatprep.mubr.bf16.mxu1 %v1218_v44  ;;  %2757 = vmatprep.subr.bf16.mxu0 %v2958_v30 }
 0x232   :  { %v1139_v51 = vmax.f32 %v1123_v45, 0.0  ;;  %v1124_v52 = vadd.f32 %v1106_v0, %v916_v46  ;;  %2708 = vmatmul.mubr.bf16.gmra.mrb[24].mxu1 %v1219_v47 }
 0x233   :  { %v1137_v53 = vmax.f32 %v1121_v49, 0.0  ;;  %v1122_v54 = vadd.f32 %v1098_v7, %v914_v50  ;;  %2724 = vmatpush3.bf16.msra.mxu1 %v2949_v62  ;;  %v1167_v22 = vld [vmem:[#allocation2 + $0x7e] sm:$0xff] }
 0x234   :  { %1155 = vst [vmem:[#allocation2 + $0xb0] sm:$0xff] %v1139_v51  ;;  %v3412_v1 = vmax.f32 %v1124_v52, 0.0  ;;  %2725 = vmatprep.subr.bf16.mxu1 %v2950_v48  ;;  %v1165_v18 = vld [vmem:[#allocation2 + $0x66] sm:$0xff]  ;;  %2758 = vmatpush3.bf16.msra.mxu0 %v2958_v30  ;;  %v3447_v62 = vld [vmem:[%s3539_s2 + $0x1] ss:$0 sm:$0xff] }
 0x235   :  { %1153 = vst [vmem:[#allocation2 + $0x98] sm:$0xff] %v1137_v53  ;;  %v3417_v3 = vmax.f32 %v1122_v54, 0.0  ;;  %v1168_v60 = vld [vmem:[#allocation2 + $0x86] sm:$0xff]  ;;  %2759 = vmatprep.subr.bf16.mxu0 %v2959_v31 }
 0x236   :  { %1156 = vst [vmem:[#allocation2 + $0xb8] sm:$0xff] %v3412_v1  ;;  %v1221_v4 = vpack.c.bf16 %v3412_v1, %v1139_v51  ;;  %v1166_v16 = vld [vmem:[#allocation2 + $0x6e] sm:$0xff]  ;;  %v1178_v23 = vpack.c.bf16 %v1168_v60, %v1167_v22  ;;  %v2965_v22 = vld [vmem:[%s3537_s3 + $0xa0] sm:$0xff]  }
 0x237   :  { %1154 = vst [vmem:[#allocation2 + $0xa0] sm:$0xff] %v3417_v3  ;;  %2726 = vmatpush3.bf16.msra.mxu1 %v2950_v48  ;;  %v1220_v8 = vpack.c.bf16 %v3417_v3, %v1137_v53  ;;  %v1177_v20 = vpack.c.bf16 %v1166_v16, %v1165_v18  ;;  %v2962_v51 = vld [vmem:[%s3537_s3 + $0x88] sm:$0xff]  }
 0x238   :  { %2727 = vmatprep.subr.bf16.mxu1 %v2951_v56  ;;  %2760 = vmatpush3.bf16.msra.mxu0 %v2959_v31 }
 0x239   :  { %2711 = vmatprep.mubr.bf16.mxu1 %v1220_v8  ;;  %2761 = vmatprep.subr.bf16.mxu0 %v2960_v33 }
 0x23a   :  { %2712 = vmatmul.mubr.bf16.gmra.mrb[28].mxu1 %v1221_v4 }
 0x23b   :  { %2728 = vmatpush3.bf16.msra.mxu1 %v2951_v56  ;;  %2731 = vmatprep.mubr.bf16.mxu1 %v1173_v9  ;;  %v1171_v27 = vld [vmem:[#allocation2 + $0xae] sm:$0xff] }
 0x23c   :  { %2729 = vmatprep.subr.bf16.mxu1 %v2952_v6  ;;  %v1169_v24 = vld [vmem:[#allocation2 + $0x96] sm:$0xff]  ;;  %2762 = vmatpush3.bf16.msra.mxu0 %v2960_v33 }
 0x23d   :  { %v1172_v26 = vld [vmem:[#allocation2 + $0xb6] sm:$0xff]  ;;  %2779 = vmatprep.subr.bf16.mxu0 %v2961_v34 }
 0x23e   :  { %v1170_v21 = vld [vmem:[#allocation2 + $0x9e] sm:$0xff]  ;;  %v1180_v28 = vpack.c.bf16 %v1172_v26, %v1171_v27 }
 0x23f   :  { %2730 = vmatpush3.bf16.msra.mxu1 %v2952_v6  ;;  %v1179_v25 = vpack.c.bf16 %v1170_v21, %v1169_v24  ;;  %v2963_v6 = vld [vmem:[%s3537_s3 + $0x90] sm:$0xff]  }
 0x240   :  { %2811 = vmatprep.subr.bf16.mxu1 %v3426_v14 }
 0x242   :  { %2732 = vmatmul.mubr.bf16.vlgmr.msra.gmra.mrb[16].mxu1 %v1174_v58 }
 0x243   :  { %2735 = vmatprep.mubr.bf16.mxu1 %v1175_v59  ;;  %v2964_v59 = vld [vmem:[%s3537_s3 + $0x98] sm:$0xff]  }
 0x24a   :  { %2736 = vmatmul.mubr.bf16.gmra.mrb[20].mxu1 %v1176_v19 }
 0x24b   :  { %2739 = vmatprep.mubr.bf16.mxu1 %v1177_v20 }
 0x252   :  { %2740 = vmatmul.mubr.bf16.gmra.mrb[24].mxu1 %v1178_v23 }
 0x253   :  { %2743 = vmatprep.mubr.bf16.mxu1 %v1179_v25 }
 0x25a   :  { %2744 = vmatmul.mubr.bf16.gmra.mrb[28].mxu1 %v1180_v28 }
 0x25b   :  { %2827 = vmatprep.mubr.msk.bf16.mxu1 %vm2979_vm0, %v3426_v14 }
 0x315   :  { %v2733_v37 = vpop.f32.mrb[16].mxu1 }
 0x316   :  { %v1539_v38 = vadd.f32 %v2733_v37, %v3447_v62  ;;  %v1466_v39 = vpop.f32.mrb[17].mxu1 }
 0x317   :  { %v1537_v40 = vadd.f32 %v3447_v62, %v1466_v39  ;;  %v2734_v63 = vpop.f32.mrb[18].mxu1 }
 0x318   :  { %v1555_v41 = vmax.f32 %v1539_v38, 0.0  ;;  %v1540_v42 = vadd.f32 %v2734_v63, %v3447_v62  ;;  %v1469_v43 = vpop.f32.mrb[19].mxu1  ;;  %v2967_v63 = vld [vmem:[%s3537_s3 + $0xb0] sm:$0xff]  }
 0x319   :  { %v1553_v44 = vmax.f32 %v1537_v40, 0.0  ;;  %v1538_v45 = vadd.f32 %v3447_v62, %v1469_v43 }
 0x31a   :  { %1571 = vst [vmem:[#allocation3 + $0x20] sm:$0xff] %v1555_v41  ;;  %v1556_v46 = vmax.f32 %v1540_v42, 0.0 }
 0x31b   :  { %1569 = vst [vmem:[#allocation3 + $0x8] sm:$0xff] %v1553_v44  ;;  %v1554_v0 = vmax.f32 %v1538_v45, 0.0 }
 0x31c   :  { %1572 = vst [vmem:[#allocation3 + $0x28] sm:$0xff] %v1556_v46  ;;  %v1643_v47 = vpack.c.bf16 %v1556_v46, %v1555_v41 }
 0x31d   :  { %1570 = vst [vmem:[#allocation3 + $0x10] sm:$0xff] %v1554_v0  ;;  %v2737_v48 = vpop.f32.mrb[20].mxu1  ;;  %v1642_v49 = vpack.c.bf16 %v1554_v0, %v1553_v44 }
 0x31e   :  { %v1543_v50 = vadd.f32 %v2737_v48, %v3447_v62  ;;  %v1482_v7 = vpop.f32.mrb[21].mxu1 }
 0x31f   :  { %v1541_v52 = vadd.f32 %v3447_v62, %v1482_v7  ;;  %v2738_v53 = vpop.f32.mrb[22].mxu1  ;;  %2763 = vmatprep.mubr.bf16.mxu0 %v1642_v49 }
 0x320   :  { %v1559_v54 = vmax.f32 %v1543_v50, 0.0  ;;  %v1544_v56 = vadd.f32 %v2738_v53, %v3447_v62  ;;  %v1485_v2 = vpop.f32.mrb[23].mxu1  ;;  %2764 = vmatmul.mubr.bf16.vlgmr.msra.gmra.mrb[32].mxu0 %v1643_v47 }
 0x321   :  { %v1557_v8 = vmax.f32 %v1541_v52, 0.0  ;;  %v1542_v4 = vadd.f32 %v3447_v62, %v1485_v2  ;;  %2780 = vmatpush3.bf16.msra.mxu0 %v2961_v34  ;;  %v1587_v48 = vld [vmem:[#allocation3 + $0x1e] sm:$0xff] }
 0x322   :  { %1575 = vst [vmem:[#allocation3 + $0x50] sm:$0xff] %v1559_v54  ;;  %v1560_v5 = vmax.f32 %v1544_v56, 0.0  ;;  %2781 = vmatprep.subr.bf16.mxu0 %v2962_v51  ;;  %v1585_v45 = vld [vmem:[#allocation3 + $0x6] sm:$0xff] }
 0x323   :  { %1573 = vst [vmem:[#allocation3 + $0x38] sm:$0xff] %v1557_v8  ;;  %v1558_v9 = vmax.f32 %v1542_v4, 0.0  ;;  %v1588_v0 = vld [vmem:[#allocation3 + $0x26] sm:$0xff] }
 0x324   :  { %1576 = vst [vmem:[#allocation3 + $0x58] sm:$0xff] %v1560_v5  ;;  %v1645_v10 = vpack.c.bf16 %v1560_v5, %v1559_v54  ;;  %v1586_v43 = vld [vmem:[#allocation3 + $0xe] sm:$0xff]  ;;  %v1602_v49 = vpack.c.bf16 %v1588_v0, %v1587_v48 }
 0x325   :  { %1574 = vst [vmem:[#allocation3 + $0x40] sm:$0xff] %v1558_v9  ;;  %v2741_v57 = vpop.f32.mrb[24].mxu1  ;;  %2782 = vmatpush3.bf16.msra.mxu0 %v2962_v51  ;;  %v1644_v12 = vpack.c.bf16 %v1558_v9, %v1557_v8  ;;  %v1601_v46 = vpack.c.bf16 %v1586_v43, %v1585_v45 }
 0x326   :  { %v1547_v58 = vadd.f32 %v2741_v57, %v3447_v62  ;;  %v1498_v13 = vpop.f32.mrb[25].mxu1  ;;  %2783 = vmatprep.subr.bf16.mxu0 %v2963_v6 }
 0x327   :  { %v1545_v15 = vadd.f32 %v3447_v62, %v1498_v13  ;;  %v2742_v16 = vpop.f32.mrb[26].mxu1  ;;  %2767 = vmatprep.mubr.bf16.mxu0 %v1644_v12  ;;  %v2969_v13 = vld [vmem:[%s3542_s7] sm:$0xff]  }
 0x328   :  { %v1563_v17 = vmax.f32 %v1547_v58, 0.0  ;;  %v1548_v19 = vadd.f32 %v2742_v16, %v3447_v62  ;;  %v1501_v18 = vpop.f32.mrb[27].mxu1  ;;  %2768 = vmatmul.mubr.bf16.gmra.mrb[36].mxu0 %v1645_v10  ;;  %2812 = vmatpush3.bf16.msra.mxu1 %v2969_v13  ;;  %v2972_v16 = vld [vmem:[%s3542_s7 + $0x18] sm:$0xff]  }
 0x329   :  { %v1561_v20 = vmax.f32 %v1545_v15, 0.0  ;;  %v1546_v60 = vadd.f32 %v3447_v62, %v1501_v18  ;;  %2784 = vmatpush3.bf16.msra.mxu0 %v2963_v6  ;;  %v1591_v53 = vld [vmem:[#allocation3 + $0x4e] sm:$0xff]  ;;  %2813 = vmatprep.subr.bf16.mxu1 %v3426_v14 }
 0x32a   :  { %1579 = vst [vmem:[#allocation3 + $0x80] sm:$0xff] %v1563_v17  ;;  %v1564_v21 = vmax.f32 %v1548_v19, 0.0  ;;  %2785 = vmatprep.subr.bf16.mxu0 %v2964_v59  ;;  %v1589_v50 = vld [vmem:[#allocation3 + $0x36] sm:$0xff]  ;;  %v2974_v19 = vld [vmem:[%s3542_s7 + $0x28] sm:$0xff]  }
 0x32b   :  { %1577 = vst [vmem:[#allocation3 + $0x68] sm:$0xff] %v1561_v20  ;;  %v1562_v23 = vmax.f32 %v1546_v60, 0.0  ;;  %v1592_v51 = vld [vmem:[#allocation3 + $0x56] sm:$0xff]  ;;  %v2360_v60 = vld [vmem:[%s3540_s4 + $0x1] ss:$0 sm:$0xff] }
 0x32c   :  { %1580 = vst [vmem:[#allocation3 + $0x88] sm:$0xff] %v1564_v21  ;;  %v1647_v24 = vpack.c.bf16 %v1564_v21, %v1563_v17  ;;  %v1590_v47 = vld [vmem:[#allocation3 + $0x3e] sm:$0xff]  ;;  %v1604_v54 = vpack.c.bf16 %v1592_v51, %v1591_v53  ;;  %v2971_v15 = vld [vmem:[%s3542_s7 + $0x10] sm:$0xff]  }
 0x32d   :  { %1578 = vst [vmem:[#allocation3 + $0x70] sm:$0xff] %v1562_v23  ;;  %v2745_v25 = vpop.f32.mrb[28].mxu1  ;;  %2786 = vmatpush3.bf16.msra.mxu0 %v2964_v59  ;;  %v1646_v26 = vpack.c.bf16 %v1562_v23, %v1561_v20  ;;  %v1603_v7 = vpack.c.bf16 %v1590_v47, %v1589_v50  ;;  %v2970_v59 = vld [vmem:[%s3542_s7 + $0x8] sm:$0xff]   ;;  %v2973_v17 = vld [vmem:[%s3542_s7 + $0x20] sm:$0xff]   ;;  %v2975_v18 = vld [vmem:[%s3542_s7 + $0x30] sm:$0xff]  }
 0x32e   :  { %v1551_v27 = vadd.f32 %v2745_v25, %v3447_v62  ;;  %v1514_v28 = vpop.f32.mrb[29].mxu1  ;;  %2787 = vmatprep.subr.bf16.mxu0 %v2965_v22  ;;  %2814 = vmatpush3.bf16.msra.mxu1 %v2970_v59  ;;  %v2976_v20 = vld [vmem:[%s3542_s7 + $0x38] sm:$0xff]  }
 0x32f   :  { %v1549_v30 = vadd.f32 %v3447_v62, %v1514_v28  ;;  %v2746_v31 = vpop.f32.mrb[30].mxu1  ;;  %2771 = vmatprep.mubr.bf16.mxu0 %v1646_v26  ;;  %2815 = vmatprep.subr.bf16.mxu1 %v3426_v14 }
 0x330   :  { %v1567_v33 = vmax.f32 %v1551_v27, 0.0  ;;  %v1552_v34 = vadd.f32 %v2746_v31, %v3447_v62  ;;  %v1517_v37 = vpop.f32.mrb[31].mxu1  ;;  %2772 = vmatmul.mubr.bf16.gmra.mrb[40].mxu0 %v1647_v24 }
 0x331   :  { %v1565_v38 = vmax.f32 %v1549_v30, 0.0  ;;  %v1550_v39 = vadd.f32 %v3447_v62, %v1517_v37  ;;  %2788 = vmatpush3.bf16.msra.mxu0 %v2965_v22  ;;  %v2968_v62 = vld [vmem:[%s3537_s3 + $0xb8] sm:$0xff]  }
 0x332   :  { %1583 = vst [vmem:[#allocation3 + $0xb0] sm:$0xff] %v1567_v33  ;;  %v1568_v40 = vmax.f32 %v1552_v34, 0.0  ;;  %2789 = vmatprep.subr.bf16.mxu0 %v2966_v29  ;;  %v1593_v56 = vld [vmem:[#allocation3 + $0x66] sm:$0xff]  ;;  %v1595_v5 = vld [vmem:[#allocation3 + $0x7e] sm:$0xff]  ;;  %2816 = vmatpush3.bf16.msra.mxu1 %v2971_v15 }
 0x333   :  { %1581 = vst [vmem:[#allocation3 + $0x98] sm:$0xff] %v1565_v38  ;;  %v1566_v41 = vmax.f32 %v1550_v39, 0.0  ;;  %v1596_v8 = vld [vmem:[#allocation3 + $0x86] sm:$0xff]  ;;  %2817 = vmatprep.subr.bf16.mxu1 %v3426_v14 }
 0x334   :  { %1584 = vst [vmem:[#allocation3 + $0xb8] sm:$0xff] %v1568_v40  ;;  %v1649_v42 = vpack.c.bf16 %v1568_v40, %v1567_v33  ;;  %v1594_v52 = vld [vmem:[#allocation3 + $0x6e] sm:$0xff]  ;;  %v1606_v6 = vpack.c.bf16 %v1596_v8, %v1595_v5 }
 0x335   :  { %1582 = vst [vmem:[#allocation3 + $0xa0] sm:$0xff] %v1566_v41  ;;  %2790 = vmatpush3.bf16.msra.mxu0 %v2966_v29  ;;  %v1648_v44 = vpack.c.bf16 %v1566_v41, %v1565_v38  ;;  %v1605_v2 = vpack.c.bf16 %v1594_v52, %v1593_v56 }
 0x336   :  { %2791 = vmatprep.subr.bf16.mxu0 %v2967_v63  ;;  %2818 = vmatpush3.bf16.msra.mxu1 %v2972_v16  ;;  %v2361_v16 = vld [vmem:[%s3543_s8] ss:$0 sm:$0xff] }
 0x337   :  { %2775 = vmatprep.mubr.bf16.mxu0 %v1648_v44  ;;  %2819 = vmatprep.subr.bf16.mxu1 %v3426_v14 }
 0x338   :  { %2776 = vmatmul.mubr.bf16.gmra.mrb[44].mxu0 %v1649_v42 }
 0x339   :  { %2792 = vmatpush3.bf16.msra.mxu0 %v2967_v63  ;;  %2795 = vmatprep.mubr.bf16.mxu0 %v1601_v46  ;;  %v1599_v12 = vld [vmem:[#allocation3 + $0xae] sm:$0xff] }
 0x33a   :  { %2793 = vmatprep.subr.bf16.mxu0 %v2968_v62  ;;  %v1597_v9 = vld [vmem:[#allocation3 + $0x96] sm:$0xff]  ;;  %2820 = vmatpush3.bf16.msra.mxu1 %v2973_v17 }
 0x33b   :  { %v1600_v57 = vld [vmem:[#allocation3 + $0xb6] sm:$0xff]  ;;  %2821 = vmatprep.subr.bf16.mxu1 %v3426_v14 }
 0x33c   :  { %v1598_v4 = vld [vmem:[#allocation3 + $0x9e] sm:$0xff]  ;;  %v1608_v58 = vpack.c.bf16 %v1600_v57, %v1599_v12 }
 0x33d   :  { %2794 = vmatpush3.bf16.msra.mxu0 %v2968_v62  ;;  %v1607_v10 = vpack.c.bf16 %v1598_v4, %v1597_v9 }
 0x33e   :  { %2822 = vmatpush3.bf16.msra.mxu1 %v2974_v19 }
 0x33f   :  { %2823 = vmatprep.subr.bf16.mxu1 %v3426_v14 }
 0x340   :  { %2796 = vmatmul.mubr.bf16.vlgmr.msra.gmra.mrb[32].mxu0 %v1602_v49 }
 0x341   :  { %2799 = vmatprep.mubr.bf16.mxu0 %v1603_v7 }
 0x342   :  { %2824 = vmatpush3.bf16.msra.mxu1 %v2975_v18 }
 0x343   :  { %2825 = vmatprep.subr.bf16.mxu1 %v3426_v14 }
 0x346   :  { %2826 = vmatpush3.bf16.msra.mxu1 %v2976_v20 }
 0x348   :  { %2800 = vmatmul.mubr.bf16.gmra.mrb[36].mxu0 %v1604_v54 }
 0x349   :  { %2803 = vmatprep.mubr.bf16.mxu0 %v1605_v2 }
 0x350   :  { %2804 = vmatmul.mubr.bf16.gmra.mrb[40].mxu0 %v1606_v6 }
 0x351   :  { %2807 = vmatprep.mubr.bf16.mxu0 %v1607_v10 }
 0x358   :  { %2808 = vmatmul.mubr.bf16.gmra.mrb[44].mxu0 %v1608_v58 }
 0x413   :  { %v2797_v21 = vpop.f32.mrb[32].mxu0 }
 0x414   :  { %v1894_v22 = vpop.f32.mrb[33].mxu0 }
 0x415   :  { %v2798_v23 = vpop.f32.mrb[34].mxu0 }
 0x416   :  { %v1968_v24 = vadd.f32 %v2798_v23, %v2360_v60  ;;  %v1897_v25 = vpop.f32.mrb[35].mxu0 }
 0x417   :  { %v1966_v26 = vadd.f32 %v2360_v60, %v1897_v25 }
 0x418   :  { %v1984_v27 = vmax.f32 %v1968_v24, 0.0 }
 0x419   :  { %v1982_v28 = vmax.f32 %v1966_v26, 0.0 }
 0x41a   :  { %v2016_v29 = vadd.f32 %v1984_v27, %v3337_v32 }
 0x41b   :  { %v2014_v30 = vadd.f32 %v1982_v28, %v3341_v36  ;;  %v2801_v31 = vpop.f32.mrb[36].mxu0 }
 0x41c   :  { %v2032_v33 = vmax.f32 %v2016_v29, 0.0  ;;  %v1910_v14 = vpop.f32.mrb[37].mxu0 }
 0x41d   :  { %v2030_v34 = vmax.f32 %v2014_v30, 0.0  ;;  %v2802_v37 = vpop.f32.mrb[38].mxu0 }
 0x41e   :  { %2048 = vst [vmem:[#allocation4 + $0x18] sm:$0xff] %v2032_v33  ;;  %v1972_v38 = vadd.f32 %v2802_v37, %v2360_v60  ;;  %v1913_v39 = vpop.f32.mrb[39].mxu0 }
 0x41f   :  { %2046 = vst [vmem:[#allocation4 + $0x8] sm:$0xff] %v2030_v34  ;;  %v1970_v40 = vadd.f32 %v2360_v60, %v1913_v39 }
 0x420   :  { %v1988_v63 = vmax.f32 %v1972_v38, 0.0 }
 0x421   :  { %v1986_v41 = vmax.f32 %v1970_v40, 0.0 }
 0x422   :  { %v2020_v42 = vadd.f32 %v1988_v63, %v3360_v55 }
 0x423   :  { %v2018_v43 = vadd.f32 %v1986_v41, %v3368_v11  ;;  %v2805_v44 = vpop.f32.mrb[40].mxu0 }
 0x424   :  { %v2036_v32 = vmax.f32 %v2020_v42, 0.0  ;;  %v1926_v45 = vpop.f32.mrb[41].mxu0 }
 0x425   :  { %v2034_v36 = vmax.f32 %v2018_v43, 0.0  ;;  %v2806_v62 = vpop.f32.mrb[42].mxu0 }
 0x426   :  { %2052 = vst [vmem:[#allocation4 + $0x38] sm:$0xff] %v2036_v32  ;;  %v1976_v46 = vadd.f32 %v2806_v62, %v2360_v60  ;;  %v1929_v0 = vpop.f32.mrb[43].mxu0  ;;  %v2062_v10 = vld [vmem:[#allocation4 + $0xf] ss:$16 sm:$0x3] }
 0x427   :  { %2050 = vst [vmem:[#allocation4 + $0x28] sm:$0xff] %v2034_v36  ;;  %v1974_v47 = vadd.f32 %v2360_v60, %v1929_v0 }
 0x428   :  { %v1992_v48 = vmax.f32 %v1976_v46, 0.0 }
 0x429   :  { %v1990_v49 = vmax.f32 %v1974_v47, 0.0 }
 0x42a   :  { %v2024_v50 = vadd.f32 %v1992_v48, %v3386_v61 }
 0x42b   :  { %v2022_v7 = vadd.f32 %v1990_v49, %v3394_v35  ;;  %v2809_v51 = vpop.f32.mrb[44].mxu0 }
 0x42c   :  { %v2040_v55 = vmax.f32 %v2024_v50, 0.0  ;;  %v1942_v52 = vpop.f32.mrb[45].mxu0 }
 0x42d   :  { %v2038_v11 = vmax.f32 %v2022_v7, 0.0  ;;  %v2810_v53 = vpop.f32.mrb[46].mxu0 }
 0x42e   :  { %2056 = vst [vmem:[#allocation4 + $0x58] sm:$0xff] %v2040_v55  ;;  %v1980_v54 = vadd.f32 %v2810_v53, %v2360_v60  ;;  %v1945_v56 = vpop.f32.mrb[47].mxu0  ;;  %v2063_v35 = vld [vmem:[#allocation4 + $0xf] ss:$16 sm:$0xc] }
 0x42f   :  { %2054 = vst [vmem:[#allocation4 + $0x48] sm:$0xff] %v2038_v11  ;;  %v1978_v2 = vadd.f32 %v2360_v60, %v1945_v56  ;;  %v2064_v12 = vor.u32 %v2063_v35, %v2062_v10 }
 0x430   :  { %v1996_v8 = vmax.f32 %v1980_v54, 0.0 }
 0x431   :  { %v1994_v4 = vmax.f32 %v1978_v2, 0.0 }
 0x432   :  { %v2028_v5 = vadd.f32 %v1996_v8, %v3412_v1 }
 0x433   :  { %v2026_v6 = vadd.f32 %v1994_v4, %v3417_v3 }
 0x434   :  { %v2044_v9 = vmax.f32 %v2028_v5, 0.0 }
 0x435   :  { %v2042_v61 = vmax.f32 %v2026_v6, 0.0 }
 0x436   :  { %2060 = vst [vmem:[#allocation4 + $0x78] sm:$0xff] %v2044_v9  ;;  %v2065_v57 = vld [vmem:[#allocation4 + $0xf] ss:$16 sm:$0x30] }
 0x437   :  { %2058 = vst [vmem:[#allocation4 + $0x68] sm:$0xff] %v2042_v61  ;;  %v2066_v58 = vor.u32 %v2065_v57, %v2064_v12 }
 0x43e   :  { %v2067_v13 = vld [vmem:[#allocation4 + $0xf] ss:$16 sm:$0xc0] }
 0x43f   :  { %v2068_v59 = vor.u32 %v2067_v13, %v2066_v58 }
 0x441   :  { %v2069_v15 = vpack.c.bf16 %v2068_v59, %v2068_v59 }
 0x443   :  { %2828 = vmatmul.mubr.bf16.vlgmr.msra.gmra.mrb[32].mxu1 %v2069_v15 }
 0x516   :  { %v2175_v1 = vpop.f32.mrb[32].mxu1 }
 0x517   :  { %v2176_v17 = vadd.f32 %v2361_v16, %v2175_v1  ;;  %v2829_v3 = vpop.f32.mrb[33].mxu1 }
 0x518   :  { %v2178_v19 = vpop.f32.mrb[34].mxu1 }
 0x519   :  { %2181 = vst [vmem:[%s3544_s9] sm:$0xff] %v2176_v17  ;;  %v2830_v18 = vpop.f32.mrb[35].mxu1 }

</bundles_post_ra>
